<compile_context>
chip_gen: v6e
topology: v6e:2x2x1
jax: 0.10.0
libtpu: 0.0.40
codegen_flags: <defaults>
</compile_context>

<pallas_src>
import math
import jax
import jax.numpy as jnp
from jax.experimental import pallas as pl
from jax.experimental.pallas import tpu as pltpu

# ----------------------- small, deterministic config -----------------------
VOCAB = 100       # synthetic vocab
MAX_POS = 16      # synthetic max position embeddings
B = 2             # batch
S = 8             # sequence length
H = 32            # hidden size
NH = 4            # attention heads
DH = H // NH      # per-head dim
FFN = 64          # feed-forward inner dim
NLAYERS = 2       # transformer layers (DistilBERT has 6; shrunk for the demo)
NUM_LABELS = 5    # config.num_labels
LN_EPS = 1e-12    # torch.nn.LayerNorm default eps used by DistilBERT
NEG_INF = -1e9


def _layernorm(x, g, b, eps=LN_EPS):
    mu = jnp.mean(x, axis=-1, keepdims=True)
    var = jnp.mean((x - mu) ** 2, axis=-1, keepdims=True)
    return (x - mu) * jax.lax.rsqrt(var + eps) * g + b


# --------------------------- fused Pallas kernel ---------------------------
def fused_forward_kernel(emb_ref, mask_ref, emb_g_ref, emb_b_ref,
                         wqkv_ref, bqkv_ref, wo_ref, bo_ref,
                         ln1g_ref, ln1b_ref,
                         w1_ref, b1_ref, w2_ref, b2_ref,
                         ln2g_ref, ln2b_ref,
                         wpre_ref, bpre_ref, wcls_ref, bcls_ref,
                         o_ref):
    scale = 1.0 / math.sqrt(DH)
    mbias = mask_ref[...]                                   # (B, 1, S) additive mask bias

    # Embedding LayerNorm; keep activations as a lane-friendly (B*S, H) slab.
    x = _layernorm(emb_ref[...].reshape(B * S, H), emb_g_ref[...], emb_b_ref[...])

    for l in range(NLAYERS):                                # static unroll over layers
        # ---------------- multi-head self-attention ----------------
        qkv = jnp.dot(x, wqkv_ref[l], preferred_element_type=jnp.float32) + bqkv_ref[l]
        q = qkv[:, 0 * H:1 * H].reshape(B, S, H)
        k = qkv[:, 1 * H:2 * H].reshape(B, S, H)
        v = qkv[:, 2 * H:3 * H].reshape(B, S, H)

        ctx_parts = []
        for h in range(NH):                                 # static unroll over heads
            sl = slice(h * DH, (h + 1) * DH)
            qh, kh, vh = q[..., sl], k[..., sl], v[..., sl]  # (B, S, DH)
            sc = jnp.einsum('bqd,bkd->bqk', qh, kh,
                            preferred_element_type=jnp.float32) * scale   # (B, S, S)
            sc = sc + mbias                                  # mask padded key positions
            sc = sc - jnp.max(sc, axis=-1, keepdims=True)
            p = jnp.exp(sc)
            p = p * pl.reciprocal(jnp.sum(p, axis=-1, keepdims=True), approx=True)
            ctx_parts.append(jnp.einsum('bqk,bkd->bqd', p, vh,
                                        preferred_element_type=jnp.float32))
        ctx = jnp.concatenate(ctx_parts, axis=-1).reshape(B * S, H)

        attn = jnp.dot(ctx, wo_ref[l], preferred_element_type=jnp.float32) + bo_ref[l]
        x = _layernorm(x + attn, ln1g_ref[l], ln1b_ref[l])

        # ------------------------ feed-forward ----------------------
        f = jnp.dot(x, w1_ref[l], preferred_element_type=jnp.float32) + b1_ref[l]
        # TODO(synk): tanh-approx GELU; exact erf GELU of HF DistilBERT differs ~1e-3.
        f = jax.nn.gelu(f, approximate=True)
        f = jnp.dot(f, w2_ref[l], preferred_element_type=jnp.float32) + b2_ref[l]
        x = _layernorm(x + f, ln2g_ref[l], ln2b_ref[l])

    # -------- classification head on the [CLS] token of each sequence --------
    pooled = jnp.concatenate([x[b * S:b * S + 1, :] for b in range(B)], axis=0)  # (B, H)
    hpre = jnp.dot(pooled, wpre_ref[...], preferred_element_type=jnp.float32) + bpre_ref[...]
    hpre = jnp.maximum(hpre, 0.0)                           # ReLU; dropout = identity (eval)
    logits = jnp.dot(hpre, wcls_ref[...], preferred_element_type=jnp.float32) + bcls_ref[...]
    logits = logits - jnp.max(logits, axis=-1, keepdims=True)
    e = jnp.exp(logits)
    o_ref[...] = e / jnp.sum(e, axis=-1, keepdims=True)     # exact normalize: sums to 1


# ------------------------------ pallas_call glue ------------------------------
_VMEM = pl.BlockSpec(memory_space=pltpu.MemorySpace.VMEM)


def distilbert_for_sequence_classification(params, input_ids, attention_mask):
    # Embedding gathers stay in plain JAX glue (data-dependent table lookup).
    positions = jnp.arange(S)
    emb = params["word_emb"][input_ids] + params["pos_emb"][positions][None, :, :]
    # Additive attention-mask bias: 0 for real tokens, -1e9 for padding. (B, 1, S)
    mask_bias = (1.0 - attention_mask.astype(jnp.float32))[:, None, :] * NEG_INF

    args = (
        emb, mask_bias,
        params["emb_ln_g"], params["emb_ln_b"],
        params["wqkv"], params["bqkv"], params["wo"], params["bo"],
        params["ln1_g"], params["ln1_b"],
        params["w1"], params["b1"], params["w2"], params["b2"],
        params["ln2_g"], params["ln2_b"],
        params["wpre"], params["bpre"], params["wcls"], params["bcls"],
    )

    flops = (NLAYERS * (2 * B * S * (3 * H * H + H * H + 2 * H * FFN)
                        + 4 * B * NH * S * S * DH)
             + 2 * B * (H * H + H * NUM_LABELS))
    transcendentals = NLAYERS * (B * NH * S * S + B * S * FFN) + B * NUM_LABELS
    bytes_accessed = sum(int(a.size) * a.dtype.itemsize for a in args) + B * NUM_LABELS * 4

    return pl.pallas_call(
        fused_forward_kernel,
        out_shape=jax.ShapeDtypeStruct((B, NUM_LABELS), jnp.float32),
        in_specs=[_VMEM] * len(args),
        out_specs=_VMEM,
        cost_estimate=pl.CostEstimate(flops=flops,
                                      transcendentals=transcendentals,
                                      bytes_accessed=bytes_accessed),
        compiler_params=pltpu.CompilerParams(vmem_limit_bytes=32 * 1024 * 1024),
    )(*args)


# ------------------------------ parameter setup ------------------------------
def init_params(key):
    def nrm(k, shape, scale=0.02):
        return jax.random.normal(k, shape, jnp.float32) * scale

    keys = iter(jax.random.split(key, 4 + 6 * NLAYERS))
    params = {
        "word_emb": nrm(next(keys), (VOCAB, H)),
        "pos_emb": nrm(next(keys), (MAX_POS, H)),
        "emb_ln_g": jnp.ones((1, H), jnp.float32),
        "emb_ln_b": jnp.zeros((1, H), jnp.float32),
        "wpre": nrm(next(keys), (H, H)),
        "bpre": jnp.zeros((1, H), jnp.float32),
        # classifier uses xavier_normal_ in the torch module; deterministic normal here.
        "wcls": jax.random.normal(next(keys), (H, NUM_LABELS), jnp.float32)
        * math.sqrt(2.0 / (H + NUM_LABELS)),
        "bcls": jnp.zeros((1, NUM_LABELS), jnp.float32),
    }

    wqkv, wo, w1, w2 = [], [], [], []
    for _ in range(NLAYERS):
        wq, wk, wv = (nrm(next(keys), (H, H)) for _ in range(3))
        wqkv.append(jnp.concatenate([wq, wk, wv], axis=1))   # fused QKV weight (H, 3H)
        wo.append(nrm(next(keys), (H, H)))
        w1.append(nrm(next(keys), (H, FFN)))
        w2.append(nrm(next(keys), (FFN, H)))

    params.update(
        wqkv=jnp.stack(wqkv), bqkv=jnp.zeros((NLAYERS, 1, 3 * H), jnp.float32),
        wo=jnp.stack(wo), bo=jnp.zeros((NLAYERS, 1, H), jnp.float32),
        ln1_g=jnp.ones((NLAYERS, 1, H), jnp.float32),
        ln1_b=jnp.zeros((NLAYERS, 1, H), jnp.float32),
        w1=jnp.stack(w1), b1=jnp.zeros((NLAYERS, 1, FFN), jnp.float32),
        w2=jnp.stack(w2), b2=jnp.zeros((NLAYERS, 1, H), jnp.float32),
        ln2_g=jnp.ones((NLAYERS, 1, H), jnp.float32),
        ln2_b=jnp.zeros((NLAYERS, 1, H), jnp.float32),
    )
    return params


# --------------------------------- main ---------------------------------
if __name__ == "__main__":
    key = jax.random.PRNGKey(0)
    pkey, ikey = jax.random.split(key)
    params = init_params(pkey)

    input_ids = jax.random.randint(ikey, (B, S), 0, VOCAB, dtype=jnp.int32)
    attention_mask = jnp.ones((B, S), jnp.int32).at[1, S - 2:].set(0)  # pad tail of seq 1

    probs = distilbert_for_sequence_classification(params, input_ids, attention_mask)
    probs = jax.block_until_ready(probs)

    assert probs.shape == (B, NUM_LABELS)
    assert bool(jnp.all(jnp.isfinite(probs)))
    assert bool(jnp.allclose(jnp.sum(probs, axis=-1), 1.0, atol=1e-5))
    print("KERNEL_OK")
</pallas_src>

<mosaic_0001>
module attributes {stable_mosaic.version = 11 : i64} {
  func.func @fused_forward_kernel(%arg0: memref<2x8x32xf32, #tpu.memory_space<vmem>>, %arg1: memref<2x1x8xf32, #tpu.memory_space<vmem>>, %arg2: memref<1x32xf32, #tpu.memory_space<vmem>>, %arg3: memref<1x32xf32, #tpu.memory_space<vmem>>, %arg4: memref<2x32x96xf32, #tpu.memory_space<vmem>>, %arg5: memref<2x1x96xf32, #tpu.memory_space<vmem>>, %arg6: memref<2x32x32xf32, #tpu.memory_space<vmem>>, %arg7: memref<2x1x32xf32, #tpu.memory_space<vmem>>, %arg8: memref<2x1x32xf32, #tpu.memory_space<vmem>>, %arg9: memref<2x1x32xf32, #tpu.memory_space<vmem>>, %arg10: memref<2x32x64xf32, #tpu.memory_space<vmem>>, %arg11: memref<2x1x64xf32, #tpu.memory_space<vmem>>, %arg12: memref<2x64x32xf32, #tpu.memory_space<vmem>>, %arg13: memref<2x1x32xf32, #tpu.memory_space<vmem>>, %arg14: memref<2x1x32xf32, #tpu.memory_space<vmem>>, %arg15: memref<2x1x32xf32, #tpu.memory_space<vmem>>, %arg16: memref<32x32xf32, #tpu.memory_space<vmem>>, %arg17: memref<1x32xf32, #tpu.memory_space<vmem>>, %arg18: memref<32x5xf32, #tpu.memory_space<vmem>>, %arg19: memref<1x5xf32, #tpu.memory_space<vmem>>, %arg20: memref<2x5xf32, #tpu.memory_space<vmem>>) attributes {dimension_semantics = [], scalar_prefetch = 0 : i64, scratch_operands = 0 : i64, tpu.core_type = #tpu.core_type<tc>} {
    %c0 = arith.constant 0 : index
    %c0_0 = arith.constant 0 : index
    %c0_1 = arith.constant 0 : index
    %0 = vector.load %arg1[%c0, %c0_0, %c0_1] : memref<2x1x8xf32, #tpu.memory_space<vmem>>, vector<2x1x8xf32>
    %c0_2 = arith.constant 0 : index
    %c0_3 = arith.constant 0 : index
    %c0_4 = arith.constant 0 : index
    %1 = vector.load %arg0[%c0_2, %c0_3, %c0_4] : memref<2x8x32xf32, #tpu.memory_space<vmem>>, vector<2x8x32xf32>
    %2 = vector.shape_cast %1 : vector<2x8x32xf32> to vector<16x32xf32>
    %c0_5 = arith.constant 0 : index
    %c0_6 = arith.constant 0 : index
    %3 = vector.load %arg2[%c0_5, %c0_6] : memref<1x32xf32, #tpu.memory_space<vmem>>, vector<1x32xf32>
    %c0_7 = arith.constant 0 : index
    %c0_8 = arith.constant 0 : index
    %4 = vector.load %arg3[%c0_7, %c0_8] : memref<1x32xf32, #tpu.memory_space<vmem>>, vector<1x32xf32>
    %cst = arith.constant dense<0.000000e+00> : vector<16xf32>
    %5 = vector.multi_reduction <add>, %2, %cst [1] : vector<16x32xf32> to vector<16xf32>
    %6 = vector.shape_cast %5 : vector<16xf32> to vector<16x1xf32>
    %cst_9 = arith.constant 3.200000e+01 : f32
    %7 = vector.broadcast %cst_9 : f32 to vector<16x1xf32>
    %8 = arith.divf %6, %7 : vector<16x1xf32>
    %9 = vector.broadcast %8 : vector<16x1xf32> to vector<16x32xf32>
    %10 = arith.subf %2, %9 : vector<16x32xf32>
    %11 = arith.mulf %10, %10 : vector<16x32xf32>
    %cst_10 = arith.constant dense<0.000000e+00> : vector<16xf32>
    %12 = vector.multi_reduction <add>, %11, %cst_10 [1] : vector<16x32xf32> to vector<16xf32>
    %13 = vector.shape_cast %12 : vector<16xf32> to vector<16x1xf32>
    %cst_11 = arith.constant 3.200000e+01 : f32
    %14 = vector.broadcast %cst_11 : f32 to vector<16x1xf32>
    %15 = arith.divf %13, %14 : vector<16x1xf32>
    %16 = vector.broadcast %8 : vector<16x1xf32> to vector<16x32xf32>
    %17 = arith.subf %2, %16 : vector<16x32xf32>
    %cst_12 = arith.constant 9.99999996E-13 : f32
    %18 = vector.broadcast %cst_12 : f32 to vector<16x1xf32>
    %19 = arith.addf %15, %18 : vector<16x1xf32>
    %20 = math.rsqrt %19 : vector<16x1xf32>
    %21 = vector.broadcast %20 : vector<16x1xf32> to vector<16x32xf32>
    %22 = arith.mulf %17, %21 : vector<16x32xf32>
    %23 = vector.broadcast %3 : vector<1x32xf32> to vector<16x32xf32>
    %24 = arith.mulf %22, %23 : vector<16x32xf32>
    %25 = vector.broadcast %4 : vector<1x32xf32> to vector<16x32xf32>
    %26 = arith.addf %24, %25 : vector<16x32xf32>
    %c0_13 = arith.constant 0 : index
    %c0_14 = arith.constant 0 : index
    %c0_15 = arith.constant 0 : index
    %27 = vector.load %arg4[%c0_13, %c0_14, %c0_15] : memref<2x32x96xf32, #tpu.memory_space<vmem>>, vector<1x32x96xf32>
    %28 = vector.shape_cast %27 : vector<1x32x96xf32> to vector<32x96xf32>
    %cst_16 = arith.constant dense<0.000000e+00> : vector<16x96xf32>
    %29 = tpu.matmul %26, %28, %cst_16 {dimension_numbers = #tpu.dot_dimension_numbers<[1], [0], [0], [1], [0, 0, 1, 1], [], []>} : vector<16x32xf32>, vector<32x96xf32>, vector<16x96xf32> -> vector<16x96xf32>
    %c0_17 = arith.constant 0 : index
    %c0_18 = arith.constant 0 : index
    %c0_19 = arith.constant 0 : index
    %30 = vector.load %arg5[%c0_17, %c0_18, %c0_19] : memref<2x1x96xf32, #tpu.memory_space<vmem>>, vector<1x1x96xf32>
    %31 = vector.shape_cast %30 : vector<1x1x96xf32> to vector<1x96xf32>
    %32 = vector.broadcast %31 : vector<1x96xf32> to vector<16x96xf32>
    %33 = arith.addf %29, %32 : vector<16x96xf32>
    %34 = vector.extract_strided_slice %33 {offsets = [0, 0], sizes = [16, 32], strides = [1, 1]} : vector<16x96xf32> to vector<16x32xf32>
    %35 = vector.shape_cast %34 : vector<16x32xf32> to vector<2x8x32xf32>
    %36 = vector.extract_strided_slice %33 {offsets = [0, 32], sizes = [16, 32], strides = [1, 1]} : vector<16x96xf32> to vector<16x32xf32>
    %37 = vector.shape_cast %36 : vector<16x32xf32> to vector<2x8x32xf32>
    %38 = vector.extract_strided_slice %33 {offsets = [0, 64], sizes = [16, 32], strides = [1, 1]} : vector<16x96xf32> to vector<16x32xf32>
    %39 = vector.shape_cast %38 : vector<16x32xf32> to vector<2x8x32xf32>
    %40 = vector.extract_strided_slice %35 {offsets = [0, 0, 0], sizes = [2, 8, 8], strides = [1, 1, 1]} : vector<2x8x32xf32> to vector<2x8x8xf32>
    %41 = vector.extract_strided_slice %37 {offsets = [0, 0, 0], sizes = [2, 8, 8], strides = [1, 1, 1]} : vector<2x8x32xf32> to vector<2x8x8xf32>
    %42 = vector.extract_strided_slice %39 {offsets = [0, 0, 0], sizes = [2, 8, 8], strides = [1, 1, 1]} : vector<2x8x32xf32> to vector<2x8x8xf32>
    "tpu.trace_start"() <{level = 10 : i32, message = "bqd,bkd->bqk"}> : () -> ()
    %cst_20 = arith.constant dense<0.000000e+00> : vector<2x8x8xf32>
    %43 = tpu.matmul %40, %41, %cst_20 {dimension_numbers = #tpu.dot_dimension_numbers<[2], [2], [1], [1], [0, 0, 0, 1, 1, 1], [0], [0]>} : vector<2x8x8xf32>, vector<2x8x8xf32>, vector<2x8x8xf32> -> vector<2x8x8xf32>
    "tpu.trace_stop"() : () -> ()
    %cst_21 = arith.constant 0.353553385 : f32
    %44 = vector.broadcast %cst_21 : f32 to vector<2x8x8xf32>
    %45 = arith.mulf %43, %44 : vector<2x8x8xf32>
    %46 = vector.broadcast %0 : vector<2x1x8xf32> to vector<2x8x8xf32>
    %47 = arith.addf %45, %46 : vector<2x8x8xf32>
    %cst_22 = arith.constant dense<0xFF800000> : vector<2x8xf32>
    %48 = vector.multi_reduction <maximumf>, %47, %cst_22 [2] : vector<2x8x8xf32> to vector<2x8xf32>
    %49 = vector.shape_cast %48 : vector<2x8xf32> to vector<2x8x1xf32>
    %50 = vector.broadcast %49 : vector<2x8x1xf32> to vector<2x8x8xf32>
    %51 = arith.subf %47, %50 : vector<2x8x8xf32>
    %52 = math.exp %51 : vector<2x8x8xf32>
    %cst_23 = arith.constant dense<0.000000e+00> : vector<2x8xf32>
    %53 = vector.multi_reduction <add>, %52, %cst_23 [2] : vector<2x8x8xf32> to vector<2x8xf32>
    %54 = vector.shape_cast %53 : vector<2x8xf32> to vector<2x8x1xf32>
    %55 = tpu.reciprocal %54 {approx = true} : vector<2x8x1xf32> -> vector<2x8x1xf32>
    %56 = vector.broadcast %55 : vector<2x8x1xf32> to vector<2x8x8xf32>
    %57 = arith.mulf %52, %56 : vector<2x8x8xf32>
    "tpu.trace_start"() <{level = 10 : i32, message = "bqk,bkd->bqd"}> : () -> ()
    %cst_24 = arith.constant dense<0.000000e+00> : vector<2x8x8xf32>
    %58 = tpu.matmul %57, %42, %cst_24 {dimension_numbers = #tpu.dot_dimension_numbers<[2], [1], [1], [2], [0, 0, 0, 1, 1, 2], [0], [0]>} : vector<2x8x8xf32>, vector<2x8x8xf32>, vector<2x8x8xf32> -> vector<2x8x8xf32>
    "tpu.trace_stop"() : () -> ()
    %59 = vector.extract_strided_slice %35 {offsets = [0, 0, 8], sizes = [2, 8, 8], strides = [1, 1, 1]} : vector<2x8x32xf32> to vector<2x8x8xf32>
    %60 = vector.extract_strided_slice %37 {offsets = [0, 0, 8], sizes = [2, 8, 8], strides = [1, 1, 1]} : vector<2x8x32xf32> to vector<2x8x8xf32>
    %61 = vector.extract_strided_slice %39 {offsets = [0, 0, 8], sizes = [2, 8, 8], strides = [1, 1, 1]} : vector<2x8x32xf32> to vector<2x8x8xf32>
    "tpu.trace_start"() <{level = 10 : i32, message = "bqd,bkd->bqk"}> : () -> ()
    %cst_25 = arith.constant dense<0.000000e+00> : vector<2x8x8xf32>
    %62 = tpu.matmul %59, %60, %cst_25 {dimension_numbers = #tpu.dot_dimension_numbers<[2], [2], [1], [1], [0, 0, 0, 1, 1, 1], [0], [0]>} : vector<2x8x8xf32>, vector<2x8x8xf32>, vector<2x8x8xf32> -> vector<2x8x8xf32>
    "tpu.trace_stop"() : () -> ()
    %cst_26 = arith.constant 0.353553385 : f32
    %63 = vector.broadcast %cst_26 : f32 to vector<2x8x8xf32>
    %64 = arith.mulf %62, %63 : vector<2x8x8xf32>
    %65 = vector.broadcast %0 : vector<2x1x8xf32> to vector<2x8x8xf32>
    %66 = arith.addf %64, %65 : vector<2x8x8xf32>
    %cst_27 = arith.constant dense<0xFF800000> : vector<2x8xf32>
    %67 = vector.multi_reduction <maximumf>, %66, %cst_27 [2] : vector<2x8x8xf32> to vector<2x8xf32>
    %68 = vector.shape_cast %67 : vector<2x8xf32> to vector<2x8x1xf32>
    %69 = vector.broadcast %68 : vector<2x8x1xf32> to vector<2x8x8xf32>
    %70 = arith.subf %66, %69 : vector<2x8x8xf32>
    %71 = math.exp %70 : vector<2x8x8xf32>
    %cst_28 = arith.constant dense<0.000000e+00> : vector<2x8xf32>
    %72 = vector.multi_reduction <add>, %71, %cst_28 [2] : vector<2x8x8xf32> to vector<2x8xf32>
    %73 = vector.shape_cast %72 : vector<2x8xf32> to vector<2x8x1xf32>
    %74 = tpu.reciprocal %73 {approx = true} : vector<2x8x1xf32> -> vector<2x8x1xf32>
    %75 = vector.broadcast %74 : vector<2x8x1xf32> to vector<2x8x8xf32>
    %76 = arith.mulf %71, %75 : vector<2x8x8xf32>
    "tpu.trace_start"() <{level = 10 : i32, message = "bqk,bkd->bqd"}> : () -> ()
    %cst_29 = arith.constant dense<0.000000e+00> : vector<2x8x8xf32>
    %77 = tpu.matmul %76, %61, %cst_29 {dimension_numbers = #tpu.dot_dimension_numbers<[2], [1], [1], [2], [0, 0, 0, 1, 1, 2], [0], [0]>} : vector<2x8x8xf32>, vector<2x8x8xf32>, vector<2x8x8xf32> -> vector<2x8x8xf32>
    "tpu.trace_stop"() : () -> ()
    %78 = vector.extract_strided_slice %35 {offsets = [0, 0, 16], sizes = [2, 8, 8], strides = [1, 1, 1]} : vector<2x8x32xf32> to vector<2x8x8xf32>
    %79 = vector.extract_strided_slice %37 {offsets = [0, 0, 16], sizes = [2, 8, 8], strides = [1, 1, 1]} : vector<2x8x32xf32> to vector<2x8x8xf32>
    %80 = vector.extract_strided_slice %39 {offsets = [0, 0, 16], sizes = [2, 8, 8], strides = [1, 1, 1]} : vector<2x8x32xf32> to vector<2x8x8xf32>
    "tpu.trace_start"() <{level = 10 : i32, message = "bqd,bkd->bqk"}> : () -> ()
    %cst_30 = arith.constant dense<0.000000e+00> : vector<2x8x8xf32>
    %81 = tpu.matmul %78, %79, %cst_30 {dimension_numbers = #tpu.dot_dimension_numbers<[2], [2], [1], [1], [0, 0, 0, 1, 1, 1], [0], [0]>} : vector<2x8x8xf32>, vector<2x8x8xf32>, vector<2x8x8xf32> -> vector<2x8x8xf32>
    "tpu.trace_stop"() : () -> ()
    %cst_31 = arith.constant 0.353553385 : f32
    %82 = vector.broadcast %cst_31 : f32 to vector<2x8x8xf32>
    %83 = arith.mulf %81, %82 : vector<2x8x8xf32>
    %84 = vector.broadcast %0 : vector<2x1x8xf32> to vector<2x8x8xf32>
    %85 = arith.addf %83, %84 : vector<2x8x8xf32>
    %cst_32 = arith.constant dense<0xFF800000> : vector<2x8xf32>
    %86 = vector.multi_reduction <maximumf>, %85, %cst_32 [2] : vector<2x8x8xf32> to vector<2x8xf32>
    %87 = vector.shape_cast %86 : vector<2x8xf32> to vector<2x8x1xf32>
    %88 = vector.broadcast %87 : vector<2x8x1xf32> to vector<2x8x8xf32>
    %89 = arith.subf %85, %88 : vector<2x8x8xf32>
    %90 = math.exp %89 : vector<2x8x8xf32>
    %cst_33 = arith.constant dense<0.000000e+00> : vector<2x8xf32>
    %91 = vector.multi_reduction <add>, %90, %cst_33 [2] : vector<2x8x8xf32> to vector<2x8xf32>
    %92 = vector.shape_cast %91 : vector<2x8xf32> to vector<2x8x1xf32>
    %93 = tpu.reciprocal %92 {approx = true} : vector<2x8x1xf32> -> vector<2x8x1xf32>
    %94 = vector.broadcast %93 : vector<2x8x1xf32> to vector<2x8x8xf32>
    %95 = arith.mulf %90, %94 : vector<2x8x8xf32>
    "tpu.trace_start"() <{level = 10 : i32, message = "bqk,bkd->bqd"}> : () -> ()
    %cst_34 = arith.constant dense<0.000000e+00> : vector<2x8x8xf32>
    %96 = tpu.matmul %95, %80, %cst_34 {dimension_numbers = #tpu.dot_dimension_numbers<[2], [1], [1], [2], [0, 0, 0, 1, 1, 2], [0], [0]>} : vector<2x8x8xf32>, vector<2x8x8xf32>, vector<2x8x8xf32> -> vector<2x8x8xf32>
    "tpu.trace_stop"() : () -> ()
    %97 = vector.extract_strided_slice %35 {offsets = [0, 0, 24], sizes = [2, 8, 8], strides = [1, 1, 1]} : vector<2x8x32xf32> to vector<2x8x8xf32>
    %98 = vector.extract_strided_slice %37 {offsets = [0, 0, 24], sizes = [2, 8, 8], strides = [1, 1, 1]} : vector<2x8x32xf32> to vector<2x8x8xf32>
    %99 = vector.extract_strided_slice %39 {offsets = [0, 0, 24], sizes = [2, 8, 8], strides = [1, 1, 1]} : vector<2x8x32xf32> to vector<2x8x8xf32>
    "tpu.trace_start"() <{level = 10 : i32, message = "bqd,bkd->bqk"}> : () -> ()
    %cst_35 = arith.constant dense<0.000000e+00> : vector<2x8x8xf32>
    %100 = tpu.matmul %97, %98, %cst_35 {dimension_numbers = #tpu.dot_dimension_numbers<[2], [2], [1], [1], [0, 0, 0, 1, 1, 1], [0], [0]>} : vector<2x8x8xf32>, vector<2x8x8xf32>, vector<2x8x8xf32> -> vector<2x8x8xf32>
    "tpu.trace_stop"() : () -> ()
    %cst_36 = arith.constant 0.353553385 : f32
    %101 = vector.broadcast %cst_36 : f32 to vector<2x8x8xf32>
    %102 = arith.mulf %100, %101 : vector<2x8x8xf32>
    %103 = vector.broadcast %0 : vector<2x1x8xf32> to vector<2x8x8xf32>
    %104 = arith.addf %102, %103 : vector<2x8x8xf32>
    %cst_37 = arith.constant dense<0xFF800000> : vector<2x8xf32>
    %105 = vector.multi_reduction <maximumf>, %104, %cst_37 [2] : vector<2x8x8xf32> to vector<2x8xf32>
    %106 = vector.shape_cast %105 : vector<2x8xf32> to vector<2x8x1xf32>
    %107 = vector.broadcast %106 : vector<2x8x1xf32> to vector<2x8x8xf32>
    %108 = arith.subf %104, %107 : vector<2x8x8xf32>
    %109 = math.exp %108 : vector<2x8x8xf32>
    %cst_38 = arith.constant dense<0.000000e+00> : vector<2x8xf32>
    %110 = vector.multi_reduction <add>, %109, %cst_38 [2] : vector<2x8x8xf32> to vector<2x8xf32>
    %111 = vector.shape_cast %110 : vector<2x8xf32> to vector<2x8x1xf32>
    %112 = tpu.reciprocal %111 {approx = true} : vector<2x8x1xf32> -> vector<2x8x1xf32>
    %113 = vector.broadcast %112 : vector<2x8x1xf32> to vector<2x8x8xf32>
    %114 = arith.mulf %109, %113 : vector<2x8x8xf32>
    "tpu.trace_start"() <{level = 10 : i32, message = "bqk,bkd->bqd"}> : () -> ()
    %cst_39 = arith.constant dense<0.000000e+00> : vector<2x8x8xf32>
    %115 = tpu.matmul %114, %99, %cst_39 {dimension_numbers = #tpu.dot_dimension_numbers<[2], [1], [1], [2], [0, 0, 0, 1, 1, 2], [0], [0]>} : vector<2x8x8xf32>, vector<2x8x8xf32>, vector<2x8x8xf32> -> vector<2x8x8xf32>
    "tpu.trace_stop"() : () -> ()
    %116 = tpu.concatenate %58, %77, %96, %115 in 2 : vector<2x8x8xf32>, vector<2x8x8xf32>, vector<2x8x8xf32>, vector<2x8x8xf32> -> vector<2x8x32xf32>
    %117 = vector.shape_cast %116 : vector<2x8x32xf32> to vector<16x32xf32>
    %c0_40 = arith.constant 0 : index
    %c0_41 = arith.constant 0 : index
    %c0_42 = arith.constant 0 : index
    %118 = vector.load %arg6[%c0_40, %c0_41, %c0_42] : memref<2x32x32xf32, #tpu.memory_space<vmem>>, vector<1x32x32xf32>
    %119 = vector.shape_cast %118 : vector<1x32x32xf32> to vector<32x32xf32>
    %cst_43 = arith.constant dense<0.000000e+00> : vector<16x32xf32>
    %120 = tpu.matmul %117, %119, %cst_43 {dimension_numbers = #tpu.dot_dimension_numbers<[1], [0], [0], [1], [0, 0, 1, 1], [], []>} : vector<16x32xf32>, vector<32x32xf32>, vector<16x32xf32> -> vector<16x32xf32>
    %c0_44 = arith.constant 0 : index
    %c0_45 = arith.constant 0 : index
    %c0_46 = arith.constant 0 : index
    %121 = vector.load %arg7[%c0_44, %c0_45, %c0_46] : memref<2x1x32xf32, #tpu.memory_space<vmem>>, vector<1x1x32xf32>
    %122 = vector.shape_cast %121 : vector<1x1x32xf32> to vector<1x32xf32>
    %123 = vector.broadcast %122 : vector<1x32xf32> to vector<16x32xf32>
    %124 = arith.addf %120, %123 : vector<16x32xf32>
    %125 = arith.addf %26, %124 : vector<16x32xf32>
    %c0_47 = arith.constant 0 : index
    %c0_48 = arith.constant 0 : index
    %c0_49 = arith.constant 0 : index
    %126 = vector.load %arg8[%c0_47, %c0_48, %c0_49] : memref<2x1x32xf32, #tpu.memory_space<vmem>>, vector<1x1x32xf32>
    %127 = vector.shape_cast %126 : vector<1x1x32xf32> to vector<1x32xf32>
    %c0_50 = arith.constant 0 : index
    %c0_51 = arith.constant 0 : index
    %c0_52 = arith.constant 0 : index
    %128 = vector.load %arg9[%c0_50, %c0_51, %c0_52] : memref<2x1x32xf32, #tpu.memory_space<vmem>>, vector<1x1x32xf32>
    %129 = vector.shape_cast %128 : vector<1x1x32xf32> to vector<1x32xf32>
    %cst_53 = arith.constant dense<0.000000e+00> : vector<16xf32>
    %130 = vector.multi_reduction <add>, %125, %cst_53 [1] : vector<16x32xf32> to vector<16xf32>
    %131 = vector.shape_cast %130 : vector<16xf32> to vector<16x1xf32>
    %cst_54 = arith.constant 3.200000e+01 : f32
    %132 = vector.broadcast %cst_54 : f32 to vector<16x1xf32>
    %133 = arith.divf %131, %132 : vector<16x1xf32>
    %134 = vector.broadcast %133 : vector<16x1xf32> to vector<16x32xf32>
    %135 = arith.subf %125, %134 : vector<16x32xf32>
    %136 = arith.mulf %135, %135 : vector<16x32xf32>
    %cst_55 = arith.constant dense<0.000000e+00> : vector<16xf32>
    %137 = vector.multi_reduction <add>, %136, %cst_55 [1] : vector<16x32xf32> to vector<16xf32>
    %138 = vector.shape_cast %137 : vector<16xf32> to vector<16x1xf32>
    %cst_56 = arith.constant 3.200000e+01 : f32
    %139 = vector.broadcast %cst_56 : f32 to vector<16x1xf32>
    %140 = arith.divf %138, %139 : vector<16x1xf32>
    %141 = vector.broadcast %133 : vector<16x1xf32> to vector<16x32xf32>
    %142 = arith.subf %125, %141 : vector<16x32xf32>
    %cst_57 = arith.constant 9.99999996E-13 : f32
    %143 = vector.broadcast %cst_57 : f32 to vector<16x1xf32>
    %144 = arith.addf %140, %143 : vector<16x1xf32>
    %145 = math.rsqrt %144 : vector<16x1xf32>
    %146 = vector.broadcast %145 : vector<16x1xf32> to vector<16x32xf32>
    %147 = arith.mulf %142, %146 : vector<16x32xf32>
    %148 = vector.broadcast %127 : vector<1x32xf32> to vector<16x32xf32>
    %149 = arith.mulf %147, %148 : vector<16x32xf32>
    %150 = vector.broadcast %129 : vector<1x32xf32> to vector<16x32xf32>
    %151 = arith.addf %149, %150 : vector<16x32xf32>
    %c0_58 = arith.constant 0 : index
    %c0_59 = arith.constant 0 : index
    %c0_60 = arith.constant 0 : index
    %152 = vector.load %arg10[%c0_58, %c0_59, %c0_60] : memref<2x32x64xf32, #tpu.memory_space<vmem>>, vector<1x32x64xf32>
    %153 = vector.shape_cast %152 : vector<1x32x64xf32> to vector<32x64xf32>
    %cst_61 = arith.constant dense<0.000000e+00> : vector<16x64xf32>
    %154 = tpu.matmul %151, %153, %cst_61 {dimension_numbers = #tpu.dot_dimension_numbers<[1], [0], [0], [1], [0, 0, 1, 1], [], []>} : vector<16x32xf32>, vector<32x64xf32>, vector<16x64xf32> -> vector<16x64xf32>
    %c0_62 = arith.constant 0 : index
    %c0_63 = arith.constant 0 : index
    %c0_64 = arith.constant 0 : index
    %155 = vector.load %arg11[%c0_62, %c0_63, %c0_64] : memref<2x1x64xf32, #tpu.memory_space<vmem>>, vector<1x1x64xf32>
    %156 = vector.shape_cast %155 : vector<1x1x64xf32> to vector<1x64xf32>
    %157 = vector.broadcast %156 : vector<1x64xf32> to vector<16x64xf32>
    %158 = arith.addf %154, %157 : vector<16x64xf32>
    %159 = arith.mulf %158, %158 : vector<16x64xf32>
    %160 = arith.mulf %158, %159 : vector<16x64xf32>
    %cst_65 = arith.constant 4.471500e-02 : f32
    %161 = vector.broadcast %cst_65 : f32 to vector<16x64xf32>
    %162 = arith.mulf %161, %160 : vector<16x64xf32>
    %163 = arith.addf %158, %162 : vector<16x64xf32>
    %cst_66 = arith.constant 0.797884583 : f32
    %164 = vector.broadcast %cst_66 : f32 to vector<16x64xf32>
    %165 = arith.mulf %164, %163 : vector<16x64xf32>
    %166 = math.tanh %165 : vector<16x64xf32>
    %cst_67 = arith.constant 1.000000e+00 : f32
    %167 = vector.broadcast %cst_67 : f32 to vector<16x64xf32>
    %168 = arith.addf %167, %166 : vector<16x64xf32>
    %cst_68 = arith.constant 5.000000e-01 : f32
    %169 = vector.broadcast %cst_68 : f32 to vector<16x64xf32>
    %170 = arith.mulf %169, %168 : vector<16x64xf32>
    %171 = arith.mulf %158, %170 : vector<16x64xf32>
    %c0_69 = arith.constant 0 : index
    %c0_70 = arith.constant 0 : index
    %c0_71 = arith.constant 0 : index
    %172 = vector.load %arg12[%c0_69, %c0_70, %c0_71] : memref<2x64x32xf32, #tpu.memory_space<vmem>>, vector<1x64x32xf32>
    %173 = vector.shape_cast %172 : vector<1x64x32xf32> to vector<64x32xf32>
    %cst_72 = arith.constant dense<0.000000e+00> : vector<16x32xf32>
    %174 = tpu.matmul %171, %173, %cst_72 {dimension_numbers = #tpu.dot_dimension_numbers<[1], [0], [0], [1], [0, 0, 1, 1], [], []>} : vector<16x64xf32>, vector<64x32xf32>, vector<16x32xf32> -> vector<16x32xf32>
    %c0_73 = arith.constant 0 : index
    %c0_74 = arith.constant 0 : index
    %c0_75 = arith.constant 0 : index
    %175 = vector.load %arg13[%c0_73, %c0_74, %c0_75] : memref<2x1x32xf32, #tpu.memory_space<vmem>>, vector<1x1x32xf32>
    %176 = vector.shape_cast %175 : vector<1x1x32xf32> to vector<1x32xf32>
    %177 = vector.broadcast %176 : vector<1x32xf32> to vector<16x32xf32>
    %178 = arith.addf %174, %177 : vector<16x32xf32>
    %179 = arith.addf %151, %178 : vector<16x32xf32>
    %c0_76 = arith.constant 0 : index
    %c0_77 = arith.constant 0 : index
    %c0_78 = arith.constant 0 : index
    %180 = vector.load %arg14[%c0_76, %c0_77, %c0_78] : memref<2x1x32xf32, #tpu.memory_space<vmem>>, vector<1x1x32xf32>
    %181 = vector.shape_cast %180 : vector<1x1x32xf32> to vector<1x32xf32>
    %c0_79 = arith.constant 0 : index
    %c0_80 = arith.constant 0 : index
    %c0_81 = arith.constant 0 : index
    %182 = vector.load %arg15[%c0_79, %c0_80, %c0_81] : memref<2x1x32xf32, #tpu.memory_space<vmem>>, vector<1x1x32xf32>
    %183 = vector.shape_cast %182 : vector<1x1x32xf32> to vector<1x32xf32>
    %cst_82 = arith.constant dense<0.000000e+00> : vector<16xf32>
    %184 = vector.multi_reduction <add>, %179, %cst_82 [1] : vector<16x32xf32> to vector<16xf32>
    %185 = vector.shape_cast %184 : vector<16xf32> to vector<16x1xf32>
    %cst_83 = arith.constant 3.200000e+01 : f32
    %186 = vector.broadcast %cst_83 : f32 to vector<16x1xf32>
    %187 = arith.divf %185, %186 : vector<16x1xf32>
    %188 = vector.broadcast %187 : vector<16x1xf32> to vector<16x32xf32>
    %189 = arith.subf %179, %188 : vector<16x32xf32>
    %190 = arith.mulf %189, %189 : vector<16x32xf32>
    %cst_84 = arith.constant dense<0.000000e+00> : vector<16xf32>
    %191 = vector.multi_reduction <add>, %190, %cst_84 [1] : vector<16x32xf32> to vector<16xf32>
    %192 = vector.shape_cast %191 : vector<16xf32> to vector<16x1xf32>
    %cst_85 = arith.constant 3.200000e+01 : f32
    %193 = vector.broadcast %cst_85 : f32 to vector<16x1xf32>
    %194 = arith.divf %192, %193 : vector<16x1xf32>
    %195 = vector.broadcast %187 : vector<16x1xf32> to vector<16x32xf32>
    %196 = arith.subf %179, %195 : vector<16x32xf32>
    %cst_86 = arith.constant 9.99999996E-13 : f32
    %197 = vector.broadcast %cst_86 : f32 to vector<16x1xf32>
    %198 = arith.addf %194, %197 : vector<16x1xf32>
    %199 = math.rsqrt %198 : vector<16x1xf32>
    %200 = vector.broadcast %199 : vector<16x1xf32> to vector<16x32xf32>
    %201 = arith.mulf %196, %200 : vector<16x32xf32>
    %202 = vector.broadcast %181 : vector<1x32xf32> to vector<16x32xf32>
    %203 = arith.mulf %201, %202 : vector<16x32xf32>
    %204 = vector.broadcast %183 : vector<1x32xf32> to vector<16x32xf32>
    %205 = arith.addf %203, %204 : vector<16x32xf32>
    %c1 = arith.constant 1 : index
    %c0_87 = arith.constant 0 : index
    %c0_88 = arith.constant 0 : index
    %206 = vector.load %arg4[%c1, %c0_87, %c0_88] : memref<2x32x96xf32, #tpu.memory_space<vmem>>, vector<1x32x96xf32>
    %207 = vector.shape_cast %206 : vector<1x32x96xf32> to vector<32x96xf32>
    %cst_89 = arith.constant dense<0.000000e+00> : vector<16x96xf32>
    %208 = tpu.matmul %205, %207, %cst_89 {dimension_numbers = #tpu.dot_dimension_numbers<[1], [0], [0], [1], [0, 0, 1, 1], [], []>} : vector<16x32xf32>, vector<32x96xf32>, vector<16x96xf32> -> vector<16x96xf32>
    %c1_90 = arith.constant 1 : index
    %c0_91 = arith.constant 0 : index
    %c0_92 = arith.constant 0 : index
    %209 = vector.load %arg5[%c1_90, %c0_91, %c0_92] : memref<2x1x96xf32, #tpu.memory_space<vmem>>, vector<1x1x96xf32>
    %210 = vector.shape_cast %209 : vector<1x1x96xf32> to vector<1x96xf32>
    %211 = vector.broadcast %210 : vector<1x96xf32> to vector<16x96xf32>
    %212 = arith.addf %208, %211 : vector<16x96xf32>
    %213 = vector.extract_strided_slice %212 {offsets = [0, 0], sizes = [16, 32], strides = [1, 1]} : vector<16x96xf32> to vector<16x32xf32>
    %214 = vector.shape_cast %213 : vector<16x32xf32> to vector<2x8x32xf32>
    %215 = vector.extract_strided_slice %212 {offsets = [0, 32], sizes = [16, 32], strides = [1, 1]} : vector<16x96xf32> to vector<16x32xf32>
    %216 = vector.shape_cast %215 : vector<16x32xf32> to vector<2x8x32xf32>
    %217 = vector.extract_strided_slice %212 {offsets = [0, 64], sizes = [16, 32], strides = [1, 1]} : vector<16x96xf32> to vector<16x32xf32>
    %218 = vector.shape_cast %217 : vector<16x32xf32> to vector<2x8x32xf32>
    %219 = vector.extract_strided_slice %214 {offsets = [0, 0, 0], sizes = [2, 8, 8], strides = [1, 1, 1]} : vector<2x8x32xf32> to vector<2x8x8xf32>
    %220 = vector.extract_strided_slice %216 {offsets = [0, 0, 0], sizes = [2, 8, 8], strides = [1, 1, 1]} : vector<2x8x32xf32> to vector<2x8x8xf32>
    %221 = vector.extract_strided_slice %218 {offsets = [0, 0, 0], sizes = [2, 8, 8], strides = [1, 1, 1]} : vector<2x8x32xf32> to vector<2x8x8xf32>
    "tpu.trace_start"() <{level = 10 : i32, message = "bqd,bkd->bqk"}> : () -> ()
    %cst_93 = arith.constant dense<0.000000e+00> : vector<2x8x8xf32>
    %222 = tpu.matmul %219, %220, %cst_93 {dimension_numbers = #tpu.dot_dimension_numbers<[2], [2], [1], [1], [0, 0, 0, 1, 1, 1], [0], [0]>} : vector<2x8x8xf32>, vector<2x8x8xf32>, vector<2x8x8xf32> -> vector<2x8x8xf32>
    "tpu.trace_stop"() : () -> ()
    %cst_94 = arith.constant 0.353553385 : f32
    %223 = vector.broadcast %cst_94 : f32 to vector<2x8x8xf32>
    %224 = arith.mulf %222, %223 : vector<2x8x8xf32>
    %225 = vector.broadcast %0 : vector<2x1x8xf32> to vector<2x8x8xf32>
    %226 = arith.addf %224, %225 : vector<2x8x8xf32>
    %cst_95 = arith.constant dense<0xFF800000> : vector<2x8xf32>
    %227 = vector.multi_reduction <maximumf>, %226, %cst_95 [2] : vector<2x8x8xf32> to vector<2x8xf32>
    %228 = vector.shape_cast %227 : vector<2x8xf32> to vector<2x8x1xf32>
    %229 = vector.broadcast %228 : vector<2x8x1xf32> to vector<2x8x8xf32>
    %230 = arith.subf %226, %229 : vector<2x8x8xf32>
    %231 = math.exp %230 : vector<2x8x8xf32>
    %cst_96 = arith.constant dense<0.000000e+00> : vector<2x8xf32>
    %232 = vector.multi_reduction <add>, %231, %cst_96 [2] : vector<2x8x8xf32> to vector<2x8xf32>
    %233 = vector.shape_cast %232 : vector<2x8xf32> to vector<2x8x1xf32>
    %234 = tpu.reciprocal %233 {approx = true} : vector<2x8x1xf32> -> vector<2x8x1xf32>
    %235 = vector.broadcast %234 : vector<2x8x1xf32> to vector<2x8x8xf32>
    %236 = arith.mulf %231, %235 : vector<2x8x8xf32>
    "tpu.trace_start"() <{level = 10 : i32, message = "bqk,bkd->bqd"}> : () -> ()
    %cst_97 = arith.constant dense<0.000000e+00> : vector<2x8x8xf32>
    %237 = tpu.matmul %236, %221, %cst_97 {dimension_numbers = #tpu.dot_dimension_numbers<[2], [1], [1], [2], [0, 0, 0, 1, 1, 2], [0], [0]>} : vector<2x8x8xf32>, vector<2x8x8xf32>, vector<2x8x8xf32> -> vector<2x8x8xf32>
    "tpu.trace_stop"() : () -> ()
    %238 = vector.extract_strided_slice %214 {offsets = [0, 0, 8], sizes = [2, 8, 8], strides = [1, 1, 1]} : vector<2x8x32xf32> to vector<2x8x8xf32>
    %239 = vector.extract_strided_slice %216 {offsets = [0, 0, 8], sizes = [2, 8, 8], strides = [1, 1, 1]} : vector<2x8x32xf32> to vector<2x8x8xf32>
    %240 = vector.extract_strided_slice %218 {offsets = [0, 0, 8], sizes = [2, 8, 8], strides = [1, 1, 1]} : vector<2x8x32xf32> to vector<2x8x8xf32>
    "tpu.trace_start"() <{level = 10 : i32, message = "bqd,bkd->bqk"}> : () -> ()
    %cst_98 = arith.constant dense<0.000000e+00> : vector<2x8x8xf32>
    %241 = tpu.matmul %238, %239, %cst_98 {dimension_numbers = #tpu.dot_dimension_numbers<[2], [2], [1], [1], [0, 0, 0, 1, 1, 1], [0], [0]>} : vector<2x8x8xf32>, vector<2x8x8xf32>, vector<2x8x8xf32> -> vector<2x8x8xf32>
    "tpu.trace_stop"() : () -> ()
    %cst_99 = arith.constant 0.353553385 : f32
    %242 = vector.broadcast %cst_99 : f32 to vector<2x8x8xf32>
    %243 = arith.mulf %241, %242 : vector<2x8x8xf32>
    %244 = vector.broadcast %0 : vector<2x1x8xf32> to vector<2x8x8xf32>
    %245 = arith.addf %243, %244 : vector<2x8x8xf32>
    %cst_100 = arith.constant dense<0xFF800000> : vector<2x8xf32>
    %246 = vector.multi_reduction <maximumf>, %245, %cst_100 [2] : vector<2x8x8xf32> to vector<2x8xf32>
    %247 = vector.shape_cast %246 : vector<2x8xf32> to vector<2x8x1xf32>
    %248 = vector.broadcast %247 : vector<2x8x1xf32> to vector<2x8x8xf32>
    %249 = arith.subf %245, %248 : vector<2x8x8xf32>
    %250 = math.exp %249 : vector<2x8x8xf32>
    %cst_101 = arith.constant dense<0.000000e+00> : vector<2x8xf32>
    %251 = vector.multi_reduction <add>, %250, %cst_101 [2] : vector<2x8x8xf32> to vector<2x8xf32>
    %252 = vector.shape_cast %251 : vector<2x8xf32> to vector<2x8x1xf32>
    %253 = tpu.reciprocal %252 {approx = true} : vector<2x8x1xf32> -> vector<2x8x1xf32>
    %254 = vector.broadcast %253 : vector<2x8x1xf32> to vector<2x8x8xf32>
    %255 = arith.mulf %250, %254 : vector<2x8x8xf32>
    "tpu.trace_start"() <{level = 10 : i32, message = "bqk,bkd->bqd"}> : () -> ()
    %cst_102 = arith.constant dense<0.000000e+00> : vector<2x8x8xf32>
    %256 = tpu.matmul %255, %240, %cst_102 {dimension_numbers = #tpu.dot_dimension_numbers<[2], [1], [1], [2], [0, 0, 0, 1, 1, 2], [0], [0]>} : vector<2x8x8xf32>, vector<2x8x8xf32>, vector<2x8x8xf32> -> vector<2x8x8xf32>
    "tpu.trace_stop"() : () -> ()
    %257 = vector.extract_strided_slice %214 {offsets = [0, 0, 16], sizes = [2, 8, 8], strides = [1, 1, 1]} : vector<2x8x32xf32> to vector<2x8x8xf32>
    %258 = vector.extract_strided_slice %216 {offsets = [0, 0, 16], sizes = [2, 8, 8], strides = [1, 1, 1]} : vector<2x8x32xf32> to vector<2x8x8xf32>
    %259 = vector.extract_strided_slice %218 {offsets = [0, 0, 16], sizes = [2, 8, 8], strides = [1, 1, 1]} : vector<2x8x32xf32> to vector<2x8x8xf32>
    "tpu.trace_start"() <{level = 10 : i32, message = "bqd,bkd->bqk"}> : () -> ()
    %cst_103 = arith.constant dense<0.000000e+00> : vector<2x8x8xf32>
    %260 = tpu.matmul %257, %258, %cst_103 {dimension_numbers = #tpu.dot_dimension_numbers<[2], [2], [1], [1], [0, 0, 0, 1, 1, 1], [0], [0]>} : vector<2x8x8xf32>, vector<2x8x8xf32>, vector<2x8x8xf32> -> vector<2x8x8xf32>
    "tpu.trace_stop"() : () -> ()
    %cst_104 = arith.constant 0.353553385 : f32
    %261 = vector.broadcast %cst_104 : f32 to vector<2x8x8xf32>
    %262 = arith.mulf %260, %261 : vector<2x8x8xf32>
    %263 = vector.broadcast %0 : vector<2x1x8xf32> to vector<2x8x8xf32>
    %264 = arith.addf %262, %263 : vector<2x8x8xf32>
    %cst_105 = arith.constant dense<0xFF800000> : vector<2x8xf32>
    %265 = vector.multi_reduction <maximumf>, %264, %cst_105 [2] : vector<2x8x8xf32> to vector<2x8xf32>
    %266 = vector.shape_cast %265 : vector<2x8xf32> to vector<2x8x1xf32>
    %267 = vector.broadcast %266 : vector<2x8x1xf32> to vector<2x8x8xf32>
    %268 = arith.subf %264, %267 : vector<2x8x8xf32>
    %269 = math.exp %268 : vector<2x8x8xf32>
    %cst_106 = arith.constant dense<0.000000e+00> : vector<2x8xf32>
    %270 = vector.multi_reduction <add>, %269, %cst_106 [2] : vector<2x8x8xf32> to vector<2x8xf32>
    %271 = vector.shape_cast %270 : vector<2x8xf32> to vector<2x8x1xf32>
    %272 = tpu.reciprocal %271 {approx = true} : vector<2x8x1xf32> -> vector<2x8x1xf32>
    %273 = vector.broadcast %272 : vector<2x8x1xf32> to vector<2x8x8xf32>
    %274 = arith.mulf %269, %273 : vector<2x8x8xf32>
    "tpu.trace_start"() <{level = 10 : i32, message = "bqk,bkd->bqd"}> : () -> ()
    %cst_107 = arith.constant dense<0.000000e+00> : vector<2x8x8xf32>
    %275 = tpu.matmul %274, %259, %cst_107 {dimension_numbers = #tpu.dot_dimension_numbers<[2], [1], [1], [2], [0, 0, 0, 1, 1, 2], [0], [0]>} : vector<2x8x8xf32>, vector<2x8x8xf32>, vector<2x8x8xf32> -> vector<2x8x8xf32>
    "tpu.trace_stop"() : () -> ()
    %276 = vector.extract_strided_slice %214 {offsets = [0, 0, 24], sizes = [2, 8, 8], strides = [1, 1, 1]} : vector<2x8x32xf32> to vector<2x8x8xf32>
    %277 = vector.extract_strided_slice %216 {offsets = [0, 0, 24], sizes = [2, 8, 8], strides = [1, 1, 1]} : vector<2x8x32xf32> to vector<2x8x8xf32>
    %278 = vector.extract_strided_slice %218 {offsets = [0, 0, 24], sizes = [2, 8, 8], strides = [1, 1, 1]} : vector<2x8x32xf32> to vector<2x8x8xf32>
    "tpu.trace_start"() <{level = 10 : i32, message = "bqd,bkd->bqk"}> : () -> ()
    %cst_108 = arith.constant dense<0.000000e+00> : vector<2x8x8xf32>
    %279 = tpu.matmul %276, %277, %cst_108 {dimension_numbers = #tpu.dot_dimension_numbers<[2], [2], [1], [1], [0, 0, 0, 1, 1, 1], [0], [0]>} : vector<2x8x8xf32>, vector<2x8x8xf32>, vector<2x8x8xf32> -> vector<2x8x8xf32>
    "tpu.trace_stop"() : () -> ()
    %cst_109 = arith.constant 0.353553385 : f32
    %280 = vector.broadcast %cst_109 : f32 to vector<2x8x8xf32>
    %281 = arith.mulf %279, %280 : vector<2x8x8xf32>
    %282 = vector.broadcast %0 : vector<2x1x8xf32> to vector<2x8x8xf32>
    %283 = arith.addf %281, %282 : vector<2x8x8xf32>
    %cst_110 = arith.constant dense<0xFF800000> : vector<2x8xf32>
    %284 = vector.multi_reduction <maximumf>, %283, %cst_110 [2] : vector<2x8x8xf32> to vector<2x8xf32>
    %285 = vector.shape_cast %284 : vector<2x8xf32> to vector<2x8x1xf32>
    %286 = vector.broadcast %285 : vector<2x8x1xf32> to vector<2x8x8xf32>
    %287 = arith.subf %283, %286 : vector<2x8x8xf32>
    %288 = math.exp %287 : vector<2x8x8xf32>
    %cst_111 = arith.constant dense<0.000000e+00> : vector<2x8xf32>
    %289 = vector.multi_reduction <add>, %288, %cst_111 [2] : vector<2x8x8xf32> to vector<2x8xf32>
    %290 = vector.shape_cast %289 : vector<2x8xf32> to vector<2x8x1xf32>
    %291 = tpu.reciprocal %290 {approx = true} : vector<2x8x1xf32> -> vector<2x8x1xf32>
    %292 = vector.broadcast %291 : vector<2x8x1xf32> to vector<2x8x8xf32>
    %293 = arith.mulf %288, %292 : vector<2x8x8xf32>
    "tpu.trace_start"() <{level = 10 : i32, message = "bqk,bkd->bqd"}> : () -> ()
    %cst_112 = arith.constant dense<0.000000e+00> : vector<2x8x8xf32>
    %294 = tpu.matmul %293, %278, %cst_112 {dimension_numbers = #tpu.dot_dimension_numbers<[2], [1], [1], [2], [0, 0, 0, 1, 1, 2], [0], [0]>} : vector<2x8x8xf32>, vector<2x8x8xf32>, vector<2x8x8xf32> -> vector<2x8x8xf32>
    "tpu.trace_stop"() : () -> ()
    %295 = tpu.concatenate %237, %256, %275, %294 in 2 : vector<2x8x8xf32>, vector<2x8x8xf32>, vector<2x8x8xf32>, vector<2x8x8xf32> -> vector<2x8x32xf32>
    %296 = vector.shape_cast %295 : vector<2x8x32xf32> to vector<16x32xf32>
    %c1_113 = arith.constant 1 : index
    %c0_114 = arith.constant 0 : index
    %c0_115 = arith.constant 0 : index
    %297 = vector.load %arg6[%c1_113, %c0_114, %c0_115] : memref<2x32x32xf32, #tpu.memory_space<vmem>>, vector<1x32x32xf32>
    %298 = vector.shape_cast %297 : vector<1x32x32xf32> to vector<32x32xf32>
    %cst_116 = arith.constant dense<0.000000e+00> : vector<16x32xf32>
    %299 = tpu.matmul %296, %298, %cst_116 {dimension_numbers = #tpu.dot_dimension_numbers<[1], [0], [0], [1], [0, 0, 1, 1], [], []>} : vector<16x32xf32>, vector<32x32xf32>, vector<16x32xf32> -> vector<16x32xf32>
    %c1_117 = arith.constant 1 : index
    %c0_118 = arith.constant 0 : index
    %c0_119 = arith.constant 0 : index
    %300 = vector.load %arg7[%c1_117, %c0_118, %c0_119] : memref<2x1x32xf32, #tpu.memory_space<vmem>>, vector<1x1x32xf32>
    %301 = vector.shape_cast %300 : vector<1x1x32xf32> to vector<1x32xf32>
    %302 = vector.broadcast %301 : vector<1x32xf32> to vector<16x32xf32>
    %303 = arith.addf %299, %302 : vector<16x32xf32>
    %304 = arith.addf %205, %303 : vector<16x32xf32>
    %c1_120 = arith.constant 1 : index
    %c0_121 = arith.constant 0 : index
    %c0_122 = arith.constant 0 : index
    %305 = vector.load %arg8[%c1_120, %c0_121, %c0_122] : memref<2x1x32xf32, #tpu.memory_space<vmem>>, vector<1x1x32xf32>
    %306 = vector.shape_cast %305 : vector<1x1x32xf32> to vector<1x32xf32>
    %c1_123 = arith.constant 1 : index
    %c0_124 = arith.constant 0 : index
    %c0_125 = arith.constant 0 : index
    %307 = vector.load %arg9[%c1_123, %c0_124, %c0_125] : memref<2x1x32xf32, #tpu.memory_space<vmem>>, vector<1x1x32xf32>
    %308 = vector.shape_cast %307 : vector<1x1x32xf32> to vector<1x32xf32>
    %cst_126 = arith.constant dense<0.000000e+00> : vector<16xf32>
    %309 = vector.multi_reduction <add>, %304, %cst_126 [1] : vector<16x32xf32> to vector<16xf32>
    %310 = vector.shape_cast %309 : vector<16xf32> to vector<16x1xf32>
    %cst_127 = arith.constant 3.200000e+01 : f32
    %311 = vector.broadcast %cst_127 : f32 to vector<16x1xf32>
    %312 = arith.divf %310, %311 : vector<16x1xf32>
    %313 = vector.broadcast %312 : vector<16x1xf32> to vector<16x32xf32>
    %314 = arith.subf %304, %313 : vector<16x32xf32>
    %315 = arith.mulf %314, %314 : vector<16x32xf32>
    %cst_128 = arith.constant dense<0.000000e+00> : vector<16xf32>
    %316 = vector.multi_reduction <add>, %315, %cst_128 [1] : vector<16x32xf32> to vector<16xf32>
    %317 = vector.shape_cast %316 : vector<16xf32> to vector<16x1xf32>
    %cst_129 = arith.constant 3.200000e+01 : f32
    %318 = vector.broadcast %cst_129 : f32 to vector<16x1xf32>
    %319 = arith.divf %317, %318 : vector<16x1xf32>
    %320 = vector.broadcast %312 : vector<16x1xf32> to vector<16x32xf32>
    %321 = arith.subf %304, %320 : vector<16x32xf32>
    %cst_130 = arith.constant 9.99999996E-13 : f32
    %322 = vector.broadcast %cst_130 : f32 to vector<16x1xf32>
    %323 = arith.addf %319, %322 : vector<16x1xf32>
    %324 = math.rsqrt %323 : vector<16x1xf32>
    %325 = vector.broadcast %324 : vector<16x1xf32> to vector<16x32xf32>
    %326 = arith.mulf %321, %325 : vector<16x32xf32>
    %327 = vector.broadcast %306 : vector<1x32xf32> to vector<16x32xf32>
    %328 = arith.mulf %326, %327 : vector<16x32xf32>
    %329 = vector.broadcast %308 : vector<1x32xf32> to vector<16x32xf32>
    %330 = arith.addf %328, %329 : vector<16x32xf32>
    %c1_131 = arith.constant 1 : index
    %c0_132 = arith.constant 0 : index
    %c0_133 = arith.constant 0 : index
    %331 = vector.load %arg10[%c1_131, %c0_132, %c0_133] : memref<2x32x64xf32, #tpu.memory_space<vmem>>, vector<1x32x64xf32>
    %332 = vector.shape_cast %331 : vector<1x32x64xf32> to vector<32x64xf32>
    %cst_134 = arith.constant dense<0.000000e+00> : vector<16x64xf32>
    %333 = tpu.matmul %330, %332, %cst_134 {dimension_numbers = #tpu.dot_dimension_numbers<[1], [0], [0], [1], [0, 0, 1, 1], [], []>} : vector<16x32xf32>, vector<32x64xf32>, vector<16x64xf32> -> vector<16x64xf32>
    %c1_135 = arith.constant 1 : index
    %c0_136 = arith.constant 0 : index
    %c0_137 = arith.constant 0 : index
    %334 = vector.load %arg11[%c1_135, %c0_136, %c0_137] : memref<2x1x64xf32, #tpu.memory_space<vmem>>, vector<1x1x64xf32>
    %335 = vector.shape_cast %334 : vector<1x1x64xf32> to vector<1x64xf32>
    %336 = vector.broadcast %335 : vector<1x64xf32> to vector<16x64xf32>
    %337 = arith.addf %333, %336 : vector<16x64xf32>
    %338 = arith.mulf %337, %337 : vector<16x64xf32>
    %339 = arith.mulf %337, %338 : vector<16x64xf32>
    %cst_138 = arith.constant 4.471500e-02 : f32
    %340 = vector.broadcast %cst_138 : f32 to vector<16x64xf32>
    %341 = arith.mulf %340, %339 : vector<16x64xf32>
    %342 = arith.addf %337, %341 : vector<16x64xf32>
    %cst_139 = arith.constant 0.797884583 : f32
    %343 = vector.broadcast %cst_139 : f32 to vector<16x64xf32>
    %344 = arith.mulf %343, %342 : vector<16x64xf32>
    %345 = math.tanh %344 : vector<16x64xf32>
    %cst_140 = arith.constant 1.000000e+00 : f32
    %346 = vector.broadcast %cst_140 : f32 to vector<16x64xf32>
    %347 = arith.addf %346, %345 : vector<16x64xf32>
    %cst_141 = arith.constant 5.000000e-01 : f32
    %348 = vector.broadcast %cst_141 : f32 to vector<16x64xf32>
    %349 = arith.mulf %348, %347 : vector<16x64xf32>
    %350 = arith.mulf %337, %349 : vector<16x64xf32>
    %c1_142 = arith.constant 1 : index
    %c0_143 = arith.constant 0 : index
    %c0_144 = arith.constant 0 : index
    %351 = vector.load %arg12[%c1_142, %c0_143, %c0_144] : memref<2x64x32xf32, #tpu.memory_space<vmem>>, vector<1x64x32xf32>
    %352 = vector.shape_cast %351 : vector<1x64x32xf32> to vector<64x32xf32>
    %cst_145 = arith.constant dense<0.000000e+00> : vector<16x32xf32>
    %353 = tpu.matmul %350, %352, %cst_145 {dimension_numbers = #tpu.dot_dimension_numbers<[1], [0], [0], [1], [0, 0, 1, 1], [], []>} : vector<16x64xf32>, vector<64x32xf32>, vector<16x32xf32> -> vector<16x32xf32>
    %c1_146 = arith.constant 1 : index
    %c0_147 = arith.constant 0 : index
    %c0_148 = arith.constant 0 : index
    %354 = vector.load %arg13[%c1_146, %c0_147, %c0_148] : memref<2x1x32xf32, #tpu.memory_space<vmem>>, vector<1x1x32xf32>
    %355 = vector.shape_cast %354 : vector<1x1x32xf32> to vector<1x32xf32>
    %356 = vector.broadcast %355 : vector<1x32xf32> to vector<16x32xf32>
    %357 = arith.addf %353, %356 : vector<16x32xf32>
    %358 = arith.addf %330, %357 : vector<16x32xf32>
    %c1_149 = arith.constant 1 : index
    %c0_150 = arith.constant 0 : index
    %c0_151 = arith.constant 0 : index
    %359 = vector.load %arg14[%c1_149, %c0_150, %c0_151] : memref<2x1x32xf32, #tpu.memory_space<vmem>>, vector<1x1x32xf32>
    %360 = vector.shape_cast %359 : vector<1x1x32xf32> to vector<1x32xf32>
    %c1_152 = arith.constant 1 : index
    %c0_153 = arith.constant 0 : index
    %c0_154 = arith.constant 0 : index
    %361 = vector.load %arg15[%c1_152, %c0_153, %c0_154] : memref<2x1x32xf32, #tpu.memory_space<vmem>>, vector<1x1x32xf32>
    %362 = vector.shape_cast %361 : vector<1x1x32xf32> to vector<1x32xf32>
    %cst_155 = arith.constant dense<0.000000e+00> : vector<16xf32>
    %363 = vector.multi_reduction <add>, %358, %cst_155 [1] : vector<16x32xf32> to vector<16xf32>
    %364 = vector.shape_cast %363 : vector<16xf32> to vector<16x1xf32>
    %cst_156 = arith.constant 3.200000e+01 : f32
    %365 = vector.broadcast %cst_156 : f32 to vector<16x1xf32>
    %366 = arith.divf %364, %365 : vector<16x1xf32>
    %367 = vector.broadcast %366 : vector<16x1xf32> to vector<16x32xf32>
    %368 = arith.subf %358, %367 : vector<16x32xf32>
    %369 = arith.mulf %368, %368 : vector<16x32xf32>
    %cst_157 = arith.constant dense<0.000000e+00> : vector<16xf32>
    %370 = vector.multi_reduction <add>, %369, %cst_157 [1] : vector<16x32xf32> to vector<16xf32>
    %371 = vector.shape_cast %370 : vector<16xf32> to vector<16x1xf32>
    %cst_158 = arith.constant 3.200000e+01 : f32
    %372 = vector.broadcast %cst_158 : f32 to vector<16x1xf32>
    %373 = arith.divf %371, %372 : vector<16x1xf32>
    %374 = vector.broadcast %366 : vector<16x1xf32> to vector<16x32xf32>
    %375 = arith.subf %358, %374 : vector<16x32xf32>
    %cst_159 = arith.constant 9.99999996E-13 : f32
    %376 = vector.broadcast %cst_159 : f32 to vector<16x1xf32>
    %377 = arith.addf %373, %376 : vector<16x1xf32>
    %378 = math.rsqrt %377 : vector<16x1xf32>
    %379 = vector.broadcast %378 : vector<16x1xf32> to vector<16x32xf32>
    %380 = arith.mulf %375, %379 : vector<16x32xf32>
    %381 = vector.broadcast %360 : vector<1x32xf32> to vector<16x32xf32>
    %382 = arith.mulf %380, %381 : vector<16x32xf32>
    %383 = vector.broadcast %362 : vector<1x32xf32> to vector<16x32xf32>
    %384 = arith.addf %382, %383 : vector<16x32xf32>
    %385 = vector.extract_strided_slice %384 {offsets = [0, 0], sizes = [1, 32], strides = [1, 1]} : vector<16x32xf32> to vector<1x32xf32>
    %386 = vector.extract_strided_slice %384 {offsets = [8, 0], sizes = [1, 32], strides = [1, 1]} : vector<16x32xf32> to vector<1x32xf32>
    %387 = tpu.concatenate %385, %386 in 0 : vector<1x32xf32>, vector<1x32xf32> -> vector<2x32xf32>
    %c0_160 = arith.constant 0 : index
    %c0_161 = arith.constant 0 : index
    %388 = vector.load %arg16[%c0_160, %c0_161] : memref<32x32xf32, #tpu.memory_space<vmem>>, vector<32x32xf32>
    %cst_162 = arith.constant dense<0.000000e+00> : vector<2x32xf32>
    %389 = tpu.matmul %387, %388, %cst_162 {dimension_numbers = #tpu.dot_dimension_numbers<[1], [0], [0], [1], [0, 0, 1, 1], [], []>} : vector<2x32xf32>, vector<32x32xf32>, vector<2x32xf32> -> vector<2x32xf32>
    %c0_163 = arith.constant 0 : index
    %c0_164 = arith.constant 0 : index
    %390 = vector.load %arg17[%c0_163, %c0_164] : memref<1x32xf32, #tpu.memory_space<vmem>>, vector<1x32xf32>
    %391 = vector.broadcast %390 : vector<1x32xf32> to vector<2x32xf32>
    %392 = arith.addf %389, %391 : vector<2x32xf32>
    %cst_165 = arith.constant 0.000000e+00 : f32
    %393 = vector.broadcast %cst_165 : f32 to vector<2x32xf32>
    %394 = arith.maximumf %392, %393 : vector<2x32xf32>
    %c0_166 = arith.constant 0 : index
    %c0_167 = arith.constant 0 : index
    %395 = vector.load %arg18[%c0_166, %c0_167] : memref<32x5xf32, #tpu.memory_space<vmem>>, vector<32x5xf32>
    %cst_168 = arith.constant dense<0.000000e+00> : vector<2x5xf32>
    %396 = tpu.matmul %394, %395, %cst_168 {dimension_numbers = #tpu.dot_dimension_numbers<[1], [0], [0], [1], [0, 0, 1, 1], [], []>} : vector<2x32xf32>, vector<32x5xf32>, vector<2x5xf32> -> vector<2x5xf32>
    %c0_169 = arith.constant 0 : index
    %c0_170 = arith.constant 0 : index
    %397 = vector.load %arg19[%c0_169, %c0_170] : memref<1x5xf32, #tpu.memory_space<vmem>>, vector<1x5xf32>
    %398 = vector.broadcast %397 : vector<1x5xf32> to vector<2x5xf32>
    %399 = arith.addf %396, %398 : vector<2x5xf32>
    %cst_171 = arith.constant dense<0xFF800000> : vector<2xf32>
    %400 = vector.multi_reduction <maximumf>, %399, %cst_171 [1] : vector<2x5xf32> to vector<2xf32>
    %401 = vector.shape_cast %400 : vector<2xf32> to vector<2x1xf32>
    %402 = vector.broadcast %401 : vector<2x1xf32> to vector<2x5xf32>
    %403 = arith.subf %399, %402 : vector<2x5xf32>
    %404 = math.exp %403 : vector<2x5xf32>
    %cst_172 = arith.constant dense<0.000000e+00> : vector<2xf32>
    %405 = vector.multi_reduction <add>, %404, %cst_172 [1] : vector<2x5xf32> to vector<2xf32>
    %406 = vector.shape_cast %405 : vector<2xf32> to vector<2x1xf32>
    %407 = vector.broadcast %406 : vector<2x1xf32> to vector<2x5xf32>
    %408 = arith.divf %404, %407 : vector<2x5xf32>
    %c0_173 = arith.constant 0 : index
    %c0_174 = arith.constant 0 : index
    %409 = vector.load %arg20[%c0_173, %c0_174] : memref<2x5xf32, #tpu.memory_space<vmem>>, vector<2x5xf32>
    tpu.vector_store %arg20[%c0_173, %c0_174], %408 {strides = array<i32>} : memref<2x5xf32, #tpu.memory_space<vmem>>, vector<2x5xf32>,
    return
  }
}

</mosaic_0001>

<bundles_post_ra>
// kernel: tpu_custom_call.1
= control target key start
LH: loop header
LB: loop body
LE: loop exit
PB: predicated region body
PF: predicated region fallthrough
CT: control target
= control target key end

     0   :  { %s5587_s0 = inlined_call_operand.hbm [shape: f32[2,8,32], index: 0, kind: input, shape index: {}]   ;;  %s5588_s1 = inlined_call_operand.vmem [shape: f32[2,1,8], index: 1, kind: input, shape index: {}]   ;;  %s5589_s2 = inlined_call_operand.hbm [shape: f32[1,32], index: 2, kind: input, shape index: {}]   ;;  %s5590_s3 = inlined_call_operand.hbm [shape: f32[1,32], index: 3, kind: input, shape index: {}]   ;;  %s5591_s4 = inlined_call_operand.vmem [shape: f32[2,32,96], index: 4, kind: input, shape index: {}]   ;;  %s5592_s5 = inlined_call_operand.vmem [shape: f32[2,1,96], index: 5, kind: input, shape index: {}]   ;;  %s5593_s6 = inlined_call_operand.vmem [shape: f32[2,32,32], index: 6, kind: input, shape index: {}]   ;;  %s5594_s7 = inlined_call_operand.vmem [shape: f32[2,1,32], index: 7, kind: input, shape index: {}]   ;;  %s5595_s8 = inlined_call_operand.vmem [shape: f32[2,1,32], index: 8, kind: input, shape index: {}]   ;;  %s5596_s9 = inlined_call_operand.vmem [shape: f32[2,1,32], index: 9, kind: input, shape index: {}]   ;;  %s5597_s10 = inlined_call_operand.vmem [shape: f32[2,32,64], index: 10, kind: input, shape index: {}]   ;;  %s5598_s11 = inlined_call_operand.vmem [shape: f32[2,1,64], index: 11, kind: input, shape index: {}]   ;;  %s5599_s12 = inlined_call_operand.vmem [shape: f32[2,64,32], index: 12, kind: input, shape index: {}]   ;;  %s5600_s13 = inlined_call_operand.vmem [shape: f32[2,1,32], index: 13, kind: input, shape index: {}]   ;;  %s5601_s14 = inlined_call_operand.vmem [shape: f32[2,1,32], index: 14, kind: input, shape index: {}]   ;;  %s5602_s15 = inlined_call_operand.vmem [shape: f32[2,1,32], index: 15, kind: input, shape index: {}]   ;;  %s5603_s16 = inlined_call_operand.vmem [shape: f32[32,32], index: 16, kind: input, shape index: {}]   ;;  %s5604_s17 = inlined_call_operand.vmem [shape: f32[1,32], index: 17, kind: input, shape index: {}]   ;;  %s5605_s18 = inlined_call_operand.vmem [shape: f32[32,5], index: 18, kind: input, shape index: {}]   ;;  %s5606_s19 = inlined_call_operand.vmem [shape: f32[1,5], index: 19, kind: input, shape index: {}]   ;;  %s5607_s20 = inlined_call_operand.hbm [shape: f32[2,5], index: 20, kind: output, shape index: {}]  }
   0x1   :  { %5628 = sst [smem:[#allocation12_spill]] %s5587_s0 }
   0x2   :  { %5629 = sst [smem:[#allocation13_spill]] %s5588_s1 }
   0x3   :  { %5630 = sst [smem:[#allocation14_spill]] %s5589_s2 }
   0x4   :  { %5631 = sst [smem:[#allocation15_spill]] %s5590_s3 }
   0x5   :  { %5632 = sst [smem:[#allocation16_spill]] %s5591_s4 }
   0x6   :  { %25 = vsyncpa [#allocation3], 0 }
   0x7   :  { %26 = vsyncpa [#allocation6], 0 }
   0x8   :  { %27 = vsyncpa [#allocation4], 0  ;;  %s4813_s1 = smov [#allocation5]   ;;  %s4814_s23 = smov [#allocation2]  }
   0x9   :  { %s48_s22 = sshll.u32 %s4813_s1, 4  ;;  %s33_s24 = sshll.u32 %s4814_s23, 4  ;;  %s49_s22 = int_to_ptr.vmem [resolvable:$true] %s48_s22  ;;  %s34_s24 = int_to_ptr.vmem [resolvable:$true] %s33_s24 }
   0xa   :  { %s4735_s2 = scalar_lea.vmem %s49_s22, 16  ;;  %s4739_s25 = scalar_lea.vmem %s49_s22, 32 }
   0xb   :  { %p4736_p0 = scmp.ne.s32.totalorder %s49_s22, %s4735_s2  ;;  %p4740_p1 = scmp.lt.s32.totalorder %s49_s22, %s49_s22 }
   0xc   :  { %p4741_p2 = scmp.lt.s32.totalorder %s4739_s25, %s4735_s2 }
   0xe   :  { %p4742_p3 = por %p4741_p2, %p4740_p1 }
  0x10   :  { %p4743_p4 = pnand %p4742_p3, %p4736_p0 }
  0x12   :  { %4746 = shalt.err (!%p4743_p4)
}
  0x13   :  { %s5633_s27 = sld [smem:[#allocation14_spill]]  ;;  %s4755_s28 = scalar_lea.vmem %s34_s24, 256 }
  0x14   :  { %p4756_p5 = scmp.ne.s32.totalorder %s34_s24, %s4755_s28  ;;  %p4760_p6 = scmp.lt.s32.totalorder %s34_s24, %s34_s24 }
  0x15   :  { %p4761_p7 = scmp.lt.s32.totalorder %s4755_s28, %s4755_s28 }
  0x17   :  { %p4762_p8 = por %p4761_p7, %p4760_p6 }
  0x19   :  { %51 = dma.hbm_to_vmem [thread:$0]  %s5633_s27, 16, %s49_s22, [#allocation6]  }
  0x1a   :  { %p4763_p9 = pnand %p4762_p8, %p4756_p5 }
  0x1c   :  { %4766 = shalt.err (!%p4763_p9)
}
  0x1d   :  { %s4815_s4 = smov 128   ;;  %s5610_s29 = smov 8  }
  0x1e   :  { %s5634_s21 = sld [smem:[#allocation12_spill]]  ;;  %s4817_s1 = smov [#allocation7]  }
  0x1f   :  { %s58_s23 = sshll.u32 %s4817_s1, 4  ;;  %s59_s23 = int_to_ptr.vmem [resolvable:$true] %s58_s23 }
  0x20   :  { %s4775_s2 = scalar_lea.vmem %s59_s23, 16  ;;  %s4779_s22 = scalar_lea.vmem %s59_s23, 32 }
  0x21   :  { %p4776_p10 = scmp.ne.s32.totalorder %s59_s23, %s4775_s2  ;;  %p4780_p11 = scmp.lt.s32.totalorder %s59_s23, %s59_s23 }
  0x22   :  { %p4781_p12 = scmp.lt.s32.totalorder %s4779_s22, %s4775_s2 }
  0x24   :  { %39 = dma.hbm_to_vmem [thread:$0]  %s5634_s21, 256, %s34_s24, [#allocation3], %s4815_s4, %s4815_s4, %s5610_s29  }
  0x25   :  { %p4782_p13 = por %p4781_p12, %p4780_p11 }
  0x27   :  { %p4783_p0 = pnand %p4782_p13, %p4776_p10 }
  0x29   :  { %4786 = shalt.err (!%p4783_p0)
}
  0x2a   :  { %s5635_s26 = sld [smem:[#allocation15_spill]] }
  0x30   :  { %61 = dma.hbm_to_vmem [thread:$0]  %s5635_s26, 16, %s59_s23, [#allocation6]  }
  0x31   :  { %4807 = dma.done.wait [#allocation3], 256  }
  0x32   :  { %4808 = vsyncadd [#allocation3], 4294967040 }
  0x33   :  { %4809 = dma.done.wait [#allocation6], 32  }
  0x34   :  { %4810 = vsyncadd [#allocation6], 4294967264  ;;  %vm109_vm0 = vcmask 261120   ;;  %v105_v0 = vld [vmem:[#allocation2] sm:$0xff]  ;;  %v106_v1 = vld [vmem:[#allocation2 + $0x8] sm:$0xff]  ;;  %s5636_s28 = sld [smem:[#allocation16_spill]] }
  0x35   :  { %v110_v2 = vsel %vm109_vm0, %v105_v0, 0.0  ;;  %v113_v3 = vsel %vm109_vm0, %v106_v1, 0.0  ;;  %v4076_v25 = vld [vmem:[#allocation5] ss:$0 sm:$0xff]  ;;  %v4077_v27 = vld [vmem:[#allocation7] ss:$0 sm:$0xff] }
  0x36   :  { %111 = vadd.xlane.f32.xlu0 %v110_v2  ;;  %v4818_v34 = vmov 0.0   ;;  %vm4819_vm1 = vmmov 0   ;;  %v4078_v35 = vld [vmem:[%s5592_s5] ss:$0 sm:$0xff]  ;;  %s4820_s25 = smov 96   ;;  %vm248_vm2 = vcmask 64512  }
  0x37   :  { %4333 = vmatprep.subr.mxu1 %v4818_v34  ;;  %4335 = vmatprep.mubr.msk.f32.mxu1 %vm4819_vm1, %v4818_v34  ;;  %s5637_s24 = sld [smem:[#allocation13_spill]]  ;;  %s4821_s30 = smov 64   ;;  %vm1621_vm3 = vcmask 195584   ;;  %vm1618_vm4 = vcmask 130048   ;;  %vm1887_vm5 = vcmask 523264   ;;  %vm3876_vm6 = vcmask 1040384  }
  0x38   :  { %s4822_s0 = smov 88   ;;  %s4823_s21 = smov 120   ;;  %vm4047_vm7 = vcmask 33792  }
  0x39   :  { %s4824_s1 = smov 56   ;;  %s5624_s23 = smov 80  }
  0x3a   :  { %114 = vadd.xlane.f32.xlu0 %v113_v3  ;;  %v156_v14 = vld [vmem:[%s5636_s28 + $0x18] sm:$0xff]  ;;  %v155_v15 = vld [vmem:[%s5636_s28 + $0x10] sm:$0xff]  ;;  %v154_v16 = vld [vmem:[%s5636_s28 + $0x8] sm:$0xff]  ;;  %s5622_s2 = smov 112   ;;  %s5620_s22 = smov 48  }
  0x3b   :  { %4322 = vmatprep.subr.mxu0 %v156_v14  ;;  %v153_v17 = vld [vmem:[%s5636_s28] sm:$0xff]  ;;  %s5618_s3 = smov 72   ;;  %s5612_s26 = smov 104  }
  0x3c   :  { %4323 = vmatpush3.msra.mxu0 %v156_v14  ;;  %s5614_s27 = smov 40   ;;  %s5616_s4 = smov 16  }
  0x3d   :  { %4324 = vmatprep.subr.mxu0 %v155_v15  ;;  %v5005_v43 = vld [vmem:[%s5637_s24] ss:$0 sm:$0xff]  ;;  %v5011_v48 = vld [vmem:[%s5637_s24 + $0x1] ss:$0 sm:$0xff] }
  0x3e   :  { %4325 = vmatpush3.msra.mxu0 %v155_v15 }
  0x3f   :  { %4326 = vmatprep.subr.mxu0 %v154_v16 }
  0x40   :  { %4327 = vmatpush3.msra.mxu0 %v154_v16 }
  0x41   :  { %4328 = vmatprep.subr.mxu0 %v153_v17 }
  0x42   :  { %4329 = vmatpush3.msra.mxu0 %v153_v17 }
  0x43   :  { %4343 = vmatprep.subr.mxu0 %v4818_v34 }
  0xbf   :  { %v112_v4 = vpop.xlane.xlu0 %111 }
  0xc0   :  { %v117_v5 = vmul.f32 0.03125, %v112_v4 }
  0xc2   :  { %v119_v6 = vsub.f32 %v105_v0, %v117_v5 }
  0xc3   :  { %v115_v7 = vpop.xlane.xlu0 %114 }
  0xc4   :  { %v118_v8 = vmul.f32 0.03125, %v115_v7  ;;  %v121_v9 = vmul.f32 %v119_v6, %v119_v6 }
  0xc6   :  { %v120_v10 = vsub.f32 %v106_v1, %v118_v8  ;;  %v123_v11 = vsel %vm109_vm0, %v121_v9, 0.0 }
  0xc7   :  { %124 = vadd.xlane.f32.xlu1 %v123_v11 }
  0xc8   :  { %v122_v12 = vmul.f32 %v120_v10, %v120_v10 }
  0xca   :  { %v126_v13 = vsel %vm109_vm0, %v122_v12, 0.0 }
  0xcb   :  { %127 = vadd.xlane.f32.xlu1 %v126_v13 }
 0x150   :  { %v125_v18 = vpop.xlane.xlu1 %124 }
 0x151   :  { %v129_v19 = vmul.f32 0.03125, %v125_v18 }
 0x153   :  { %v131_v20 = vadd.f32 1e-12, %v129_v19 }
 0x154   :  { %v128_v21 = vpop.xlane.xlu1 %127 }
 0x155   :  { %4629 = vrsqrt.f32 %v131_v20  ;;  %v130_v22 = vmul.f32 0.03125, %v128_v21 }
 0x157   :  { %v132_v23 = vadd.f32 1e-12, %v130_v22 }
 0x159   :  { %4631 = vrsqrt.f32 %v132_v23 }
 0x162   :  { %v4630_v24 = vpop.eup %4629 }
 0x163   :  { %v135_v26 = vmul.f32 %v4630_v24, %v119_v6 }
 0x165   :  { %v143_v28 = vmul.f32 %v4076_v25, %v135_v26 }
 0x166   :  { %v4632_v29 = vpop.eup %4631 }
 0x167   :  { %v136_v30 = vmul.f32 %v4632_v29, %v120_v10  ;;  %v4965_v31 = vadd.f32 %v4077_v27, %v143_v28 }
 0x169   :  { %v144_v32 = vmul.f32 %v4076_v25, %v136_v30  ;;  %4330 = vmatprep.mubr.msk.f32.mxu0 %vm109_vm0, %v4965_v31 }
 0x16b   :  { %v4969_v33 = vadd.f32 %v4077_v27, %v144_v32 }
 0x16d   :  { %4331 = vmatmul.mubr.msk.f32.vlgmr.msra.gmra.mxu0 %vm109_vm0, %v4969_v33 }
 0x16e   :  { %4345 = vmatprep.mubr.msk.f32.mxu0 %vm4819_vm1, %v4818_v34 }
 0x22d   :  { %v4332_v36 = vpop.f32.mrf.mxu0 }
 0x22e   :  { %v4982_v37 = vadd.f32 %v4332_v36, %v4078_v35 }
 0x22f   :  { %v236_v38 = vpop.f32.mrf.mxu0 }
 0x230   :  { %v4984_v39 = vadd.f32 %v4078_v35, %v236_v38  ;;  %324 = vrot.lane.b32.xlu1 %v4982_v37, %s4820_s25 }
 0x232   :  { %246 = vrot.lane.b32.xlu0 %v4984_v39, %s4820_s25 }
 0x2a2   :  { %v325_v41 = vpop.permute.xlu1 %324 }
 0x2a4   :  { %v247_v40 = vpop.permute.xlu0 %246 }
 0x2a5   :  { %4334 = vmatpush3.xpose.msk.msra.mxu1 %vm248_vm2, %v247_v40 }
 0x2a6   :  { %4338 = vmatprep.subr.mxu1 %v4818_v34 }
 0x2a8   :  { %4336 = vmatmul.mubr.msk.f32.vlgmr.msra.gmra.mxu1 %vm248_vm2, %v4984_v39 }
 0x2a9   :  { %4339 = vmatpush3.xpose.msk.msra.mxu1 %vm248_vm2, %v325_v41  ;;  %4340 = vmatprep.mubr.msk.f32.mxu1 %vm4819_vm1, %v4818_v34 }
 0x2aa   :  { %4348 = vmatprep.subr.mxu1 %v4818_v34 }
 0x2ac   :  { %4341 = vmatmul.mubr.msk.f32.vlgmr.msra.gmra.mxu1 %vm248_vm2, %v4982_v37 }
 0x2ad   :  { %4350 = vmatprep.mubr.msk.f32.mxu1 %vm4819_vm1, %v4818_v34 }
 0x368   :  { %v319_v42 = vpop.f32.mrf.mxu1 }
 0x369   :  { %v400_v44 = vmul.f32 0.35355338, %v319_v42 }
 0x36a   :  { %v4337_v45 = vpop.f32.mrf.mxu1 }
 0x36b   :  { %v414_v46 = vadd.f32 %v5005_v43, %v400_v44 }
 0x36c   :  { %v396_v47 = vpop.f32.mrf.mxu1 }
 0x36d   :  { %v401_v49 = vmul.f32 0.35355338, %v396_v47  ;;  %v416_v50 = vsel %vm248_vm2, %v414_v46, -inf }
 0x36e   :  { %v4342_v51 = vpop.f32.mrf.mxu1  ;;  %417 = vmax.xlane.f32.xlu1 %v416_v50 }
 0x36f   :  { %v415_v52 = vadd.f32 %v5011_v48, %v401_v49 }
 0x371   :  { %v419_v53 = vsel %vm248_vm2, %v415_v52, -inf }
 0x372   :  { %420 = vmax.xlane.f32.xlu0 %v419_v53 }
 0x37f   :  { %514 = vrot.lane.b32.xlu1 %v4982_v37, %s4821_s30 }
 0x383   :  { %592 = vrot.lane.b32.xlu1 %v4984_v39, %s4822_s0 }
 0x387   :  { %670 = vrot.lane.b32.xlu1 %v4982_v37, %s4822_s0 }
 0x3f7   :  { %v418_v54 = vpop.xlane.xlu1 %417 }
 0x3f8   :  { %v422_v55 = vsub.f32 %v414_v46, %v418_v54 }
 0x3fa   :  { %v424_v56 = vmul.f32 1.442695, %v422_v55 }
 0x3fb   :  { %v421_v57 = vpop.xlane.xlu0 %420  ;;  %v515_v58 = vpop.permute.xlu1 %514 }
 0x3fc   :  { %4633 = vpow2.f32 %v424_v56  ;;  %v423_v59 = vsub.f32 %v415_v52, %v421_v57  ;;  %4349 = vmatpush3.msra.mxu1 %v515_v58 }
 0x3fd   :  { %4358 = vmatprep.subr.mxu1 %v4818_v34 }
 0x3fe   :  { %v426_v60 = vmul.f32 1.442695, %v423_v59 }
 0x3ff   :  { %v593_v1 = vpop.permute.xlu1 %592 }
 0x400   :  { %4635 = vpow2.f32 %v426_v60 }
 0x403   :  { %v671_v2 = vpop.permute.xlu1 %670 }
 0x409   :  { %v4634_v61 = vpop.eup %4633 }
 0x40a   :  { %v428_v62 = vsel %vm248_vm2, %v4634_v61, 0.0 }
 0x40b   :  { %429 = vadd.xlane.f32.xlu0 %v428_v62 }
 0x40d   :  { %v4636_v63 = vpop.eup %4635 }
 0x40e   :  { %v431_v0 = vsel %vm248_vm2, %v4636_v63, 0.0 }
 0x40f   :  { %432 = vadd.xlane.f32.xlu1 %v431_v0 }
 0x420   :  { %668 = vrot.lane.b32.xlu1 %v4982_v37, %s4823_s21 }
 0x421   :  { %438 = vrot.lane.b32.xlu0 %v4984_v39, %s4821_s30 }
 0x425   :  { %590 = vrot.lane.b32.xlu0 %v4984_v39, %s4823_s21 }
 0x494   :  { %v430_v3 = vpop.xlane.xlu0 %429 }
 0x495   :  { %4637 = vrcp.f32 %v430_v3 }
 0x498   :  { %v439_v4 = vpop.permute.xlu0 %438  ;;  %v433_v5 = vpop.xlane.xlu1 %432 }
 0x499   :  { %4639 = vrcp.f32 %v433_v5  ;;  %4344 = vmatpush3.msra.mxu0 %v439_v4 }
 0x49a   :  { %4353 = vmatprep.subr.mxu0 %v4818_v34 }
 0x49c   :  { %v591_v10 = vpop.permute.xlu0 %590  ;;  %v669_v11 = vpop.permute.xlu1 %668 }
 0x4a2   :  { %v4638_v6 = vpop.eup %4637 }
 0x4a3   :  { %v436_v7 = vmul.f32 %v4638_v6, %v4634_v61 }
 0x4a5   :  { %4346 = vmatmul.mubr.msk.f32.vlgmr.msra.gmra.mxu0 %vm248_vm2, %v436_v7 }
 0x4a6   :  { %v4640_v8 = vpop.eup %4639  ;;  %4354 = vmatpush3.xpose.msk.msra.mxu0 %vm248_vm2, %v593_v1  ;;  %4355 = vmatprep.mubr.msk.f32.mxu0 %vm4819_vm1, %v4818_v34 }
 0x4a7   :  { %v437_v9 = vmul.f32 %v4640_v8, %v4636_v63  ;;  %4363 = vmatprep.subr.mxu0 %v4818_v34 }
 0x4a9   :  { %4351 = vmatmul.mubr.msk.f32.vlgmr.msra.gmra.mxu1 %vm248_vm2, %v437_v9  ;;  %4356 = vmatmul.mubr.msk.f32.vlgmr.msra.gmra.mxu0 %vm248_vm2, %v591_v10 }
 0x4aa   :  { %4359 = vmatpush3.xpose.msk.msra.mxu1 %vm248_vm2, %v671_v2  ;;  %4360 = vmatprep.mubr.msk.f32.mxu1 %vm4819_vm1, %v4818_v34 }
 0x4ab   :  { %4368 = vmatprep.subr.mxu1 %v4818_v34  ;;  %4365 = vmatprep.mubr.msk.f32.mxu0 %vm4819_vm1, %v4818_v34 }
 0x4ad   :  { %4361 = vmatmul.mubr.msk.f32.vlgmr.msra.gmra.mxu1 %vm248_vm2, %v669_v11 }
 0x4ae   :  { %4370 = vmatprep.mubr.msk.f32.mxu1 %vm4819_vm1, %v4818_v34 }
 0x565   :  { %v5048_v12 = vpop.f32.mrf.mxu0 }
 0x567   :  { %v4347_v13 = vpop.f32.mrf.mxu0 }
 0x569   :  { %v5050_v14 = vpop.f32.mrf.mxu1  ;;  %v664_v15 = vpop.f32.mrf.mxu0 }
 0x56a   :  { %v746_v16 = vmul.f32 0.35355338, %v664_v15 }
 0x56b   :  { %v4352_v17 = vpop.f32.mrf.mxu1  ;;  %v4357_v18 = vpop.f32.mrf.mxu0 }
 0x56c   :  { %v748_v19 = vadd.f32 %v5005_v43, %v746_v16 }
 0x56d   :  { %v742_v20 = vpop.f32.mrf.mxu1 }
 0x56e   :  { %v747_v21 = vmul.f32 0.35355338, %v742_v20  ;;  %v750_v22 = vsel %vm248_vm2, %v748_v19, -inf }
 0x56f   :  { %751 = vmax.xlane.f32.xlu0 %v750_v22  ;;  %v4362_v23 = vpop.f32.mrf.mxu1 }
 0x570   :  { %v749_v24 = vadd.f32 %v5011_v48, %v747_v21 }
 0x572   :  { %v753_v25 = vsel %vm248_vm2, %v749_v24, -inf }
 0x573   :  { %754 = vmax.xlane.f32.xlu1 %v753_v25 }
 0x584   :  { %848 = vrot.lane.b32.xlu1 %v4982_v37, %s4824_s1 }
 0x585   :  { %772 = vrot.lane.b32.xlu0 %v4984_v39, %s4824_s1 }
 0x588   :  { %926 = vrot.lane.b32.xlu1 %v4984_v39, %s5624_s23 }
 0x58c   :  { %1004 = vrot.lane.b32.xlu1 %v4982_v37, %s5624_s23  ;;  %s5642_s23 = smov 104  }
 0x590   :  { %1002 = vrot.lane.b32.xlu1 %v4982_v37, %s5622_s2 }
 0x5f8   :  { %v752_v26 = vpop.xlane.xlu0 %751 }
 0x5f9   :  { %v756_v27 = vsub.f32 %v748_v19, %v752_v26 }
 0x5fb   :  { %v758_v28 = vmul.f32 1.442695, %v756_v27 }
 0x5fc   :  { %v773_v29 = vpop.permute.xlu0 %772  ;;  %v755_v30 = vpop.xlane.xlu1 %754 }
 0x5fd   :  { %4641 = vpow2.f32 %v758_v28  ;;  %v757_v32 = vsub.f32 %v749_v24, %v755_v30  ;;  %4364 = vmatpush3.msra.mxu0 %v773_v29 }
 0x5fe   :  { %4373 = vmatprep.subr.mxu0 %v4818_v34 }
 0x5ff   :  { %v760_v35 = vmul.f32 1.442695, %v757_v32 }
 0x600   :  { %v849_v36 = vpop.permute.xlu1 %848 }
 0x601   :  { %4643 = vpow2.f32 %v760_v35  ;;  %4369 = vmatpush3.msra.mxu1 %v849_v36 }
 0x602   :  { %4378 = vmatprep.subr.mxu1 %v4818_v34 }
 0x604   :  { %v927_v46 = vpop.permute.xlu1 %926 }
 0x608   :  { %v1005_v51 = vpop.permute.xlu1 %1004 }
 0x60a   :  { %v4642_v38 = vpop.eup %4641 }
 0x60b   :  { %v762_v40 = vsel %vm248_vm2, %v4642_v38, 0.0 }
 0x60c   :  { %763 = vadd.xlane.f32.xlu0 %v762_v40  ;;  %v1003_v54 = vpop.permute.xlu1 %1002 }
 0x60e   :  { %v4644_v41 = vpop.eup %4643 }
 0x60f   :  { %v765_v42 = vsel %vm248_vm2, %v4644_v41, 0.0 }
 0x610   :  { %766 = vadd.xlane.f32.xlu0 %v765_v42 }
 0x626   :  { %924 = vrot.lane.b32.xlu0 %v4984_v39, %s5622_s2  ;;  %s5643_s2 = smov 40  }
 0x695   :  { %v764_v44 = vpop.xlane.xlu0 %763 }
 0x696   :  { %4645 = vrcp.f32 %v764_v44 }
 0x699   :  { %v767_v45 = vpop.xlane.xlu0 %766 }
 0x69a   :  { %4647 = vrcp.f32 %v767_v45 }
 0x69d   :  { %v925_v53 = vpop.permute.xlu0 %924 }
 0x6a3   :  { %v4646_v47 = vpop.eup %4645 }
 0x6a4   :  { %v770_v49 = vmul.f32 %v4646_v47, %v4642_v38 }
 0x6a6   :  { %4366 = vmatmul.mubr.msk.f32.vlgmr.msra.gmra.mxu0 %vm248_vm2, %v770_v49 }
 0x6a7   :  { %v4648_v50 = vpop.eup %4647  ;;  %4374 = vmatpush3.xpose.msk.msra.mxu0 %vm248_vm2, %v927_v46  ;;  %4375 = vmatprep.mubr.msk.f32.mxu0 %vm4819_vm1, %v4818_v34 }
 0x6a8   :  { %v771_v52 = vmul.f32 %v4648_v50, %v4644_v41  ;;  %4383 = vmatprep.subr.mxu0 %v4818_v34 }
 0x6aa   :  { %4371 = vmatmul.mubr.msk.f32.vlgmr.msra.gmra.mxu1 %vm248_vm2, %v771_v52  ;;  %4376 = vmatmul.mubr.msk.f32.vlgmr.msra.gmra.mxu0 %vm248_vm2, %v925_v53 }
 0x6ab   :  { %4379 = vmatpush3.xpose.msk.msra.mxu1 %vm248_vm2, %v1005_v51  ;;  %4380 = vmatprep.mubr.msk.f32.mxu1 %vm4819_vm1, %v4818_v34 }
 0x6ac   :  { %4388 = vmatprep.subr.mxu1 %v4818_v34  ;;  %4385 = vmatprep.mubr.msk.f32.mxu0 %vm4819_vm1, %v4818_v34 }
 0x6ae   :  { %4381 = vmatmul.mubr.msk.f32.vlgmr.msra.gmra.mxu1 %vm248_vm2, %v1003_v54 }
 0x6af   :  { %4390 = vmatprep.mubr.msk.f32.mxu1 %vm4819_vm1, %v4818_v34 }
 0x766   :  { %v5088_v55 = vpop.f32.mrf.mxu0 }
 0x768   :  { %v4367_v56 = vpop.f32.mrf.mxu0 }
 0x76a   :  { %v5090_v57 = vpop.f32.mrf.mxu1  ;;  %v998_v58 = vpop.f32.mrf.mxu0 }
 0x76b   :  { %v1080_v59 = vmul.f32 0.35355338, %v998_v58 }
 0x76c   :  { %v4372_v60 = vpop.f32.mrf.mxu1  ;;  %v4377_v61 = vpop.f32.mrf.mxu0 }
 0x76d   :  { %v1082_v62 = vadd.f32 %v5005_v43, %v1080_v59 }
 0x76e   :  { %v1076_v63 = vpop.f32.mrf.mxu1 }
 0x76f   :  { %v1081_v0 = vmul.f32 0.35355338, %v1076_v63  ;;  %v1084_v1 = vsel %vm248_vm2, %v1082_v62, -inf }
 0x770   :  { %1085 = vmax.xlane.f32.xlu0 %v1084_v1  ;;  %v4382_v2 = vpop.f32.mrf.mxu1 }
 0x771   :  { %v1083_v3 = vadd.f32 %v5011_v48, %v1081_v0 }
 0x773   :  { %v1087_v4 = vsel %vm248_vm2, %v1083_v3, -inf }
 0x774   :  { %1088 = vmax.xlane.f32.xlu1 %v1087_v4  ;;  %v1625_v4 = vld [vmem:[%s5593_s6 + $0x8] sm:$0xff] }
 0x785   :  { %1182 = vrot.lane.b32.xlu1 %v4982_v37, %s5620_s22 }
 0x786   :  { %1106 = vrot.lane.b32.xlu0 %v4984_v39, %s5620_s22  ;;  %s5644_s22 = smov 8  }
 0x789   :  { %1260 = vrot.lane.b32.xlu1 %v4984_v39, %s5618_s3 }
 0x78d   :  { %1338 = vrot.lane.b32.xlu1 %v4982_v37, %s5618_s3  ;;  %s5645_s3 = smov 16  }
 0x791   :  { %1336 = vrot.lane.b32.xlu1 %v4982_v37, %s5612_s26 }
 0x7f9   :  { %v1086_v5 = vpop.xlane.xlu0 %1085 }
 0x7fa   :  { %v1090_v6 = vsub.f32 %v1082_v62, %v1086_v5  ;;  %v1624_v5 = vld [vmem:[%s5593_s6] sm:$0xff] }
 0x7fc   :  { %v1092_v7 = vmul.f32 1.442695, %v1090_v6 }
 0x7fd   :  { %v1107_v8 = vpop.permute.xlu0 %1106  ;;  %v1089_v9 = vpop.xlane.xlu1 %1088 }
 0x7fe   :  { %4649 = vpow2.f32 %v1092_v7  ;;  %v1091_v10 = vsub.f32 %v1083_v3, %v1089_v9  ;;  %4384 = vmatpush3.msra.mxu0 %v1107_v8  ;;  %v1626_v3 = vld [vmem:[%s5593_s6 + $0x10] sm:$0xff] }
 0x7ff   :  { %4393 = vmatprep.subr.mxu0 %v4818_v34 }
 0x800   :  { %v1094_v11 = vmul.f32 1.442695, %v1091_v10 }
 0x801   :  { %v1183_v13 = vpop.permute.xlu1 %1182 }
 0x802   :  { %4651 = vpow2.f32 %v1094_v11  ;;  %4389 = vmatpush3.msra.mxu1 %v1183_v13 }
 0x803   :  { %4398 = vmatprep.subr.mxu1 %v4818_v34 }
 0x805   :  { %v1261_v21 = vpop.permute.xlu1 %1260 }
 0x809   :  { %v1339_v25 = vpop.permute.xlu1 %1338 }
 0x80b   :  { %v4650_v15 = vpop.eup %4649 }
 0x80c   :  { %v1096_v16 = vsel %vm248_vm2, %v4650_v15, 0.0 }
 0x80d   :  { %1097 = vadd.xlane.f32.xlu0 %v1096_v16  ;;  %v1337_v28 = vpop.permute.xlu1 %1336 }
 0x80f   :  { %v4652_v17 = vpop.eup %4651 }
 0x810   :  { %v1099_v18 = vsel %vm248_vm2, %v4652_v17, 0.0 }
 0x811   :  { %1100 = vadd.xlane.f32.xlu0 %v1099_v18 }
 0x827   :  { %1258 = vrot.lane.b32.xlu0 %v4984_v39, %s5612_s26 }
 0x896   :  { %v1098_v19 = vpop.xlane.xlu0 %1097 }
 0x897   :  { %4653 = vrcp.f32 %v1098_v19 }
 0x89a   :  { %v1101_v20 = vpop.xlane.xlu0 %1100 }
 0x89b   :  { %4655 = vrcp.f32 %v1101_v20 }
 0x89e   :  { %v1259_v27 = vpop.permute.xlu0 %1258 }
 0x8a4   :  { %v4654_v22 = vpop.eup %4653 }
 0x8a5   :  { %v1104_v23 = vmul.f32 %v4654_v22, %v4650_v15 }
 0x8a7   :  { %4386 = vmatmul.mubr.msk.f32.vlgmr.msra.gmra.mxu0 %vm248_vm2, %v1104_v23 }
 0x8a8   :  { %v4656_v24 = vpop.eup %4655  ;;  %4394 = vmatpush3.xpose.msk.msra.mxu0 %vm248_vm2, %v1261_v21  ;;  %4395 = vmatprep.mubr.msk.f32.mxu0 %vm4819_vm1, %v4818_v34 }
 0x8a9   :  { %v1105_v26 = vmul.f32 %v4656_v24, %v4652_v17  ;;  %4403 = vmatprep.subr.mxu0 %v4818_v34 }
 0x8ab   :  { %4391 = vmatmul.mubr.msk.f32.vlgmr.msra.gmra.mxu1 %vm248_vm2, %v1105_v26  ;;  %4396 = vmatmul.mubr.msk.f32.vlgmr.msra.gmra.mxu0 %vm248_vm2, %v1259_v27 }
 0x8ac   :  { %4399 = vmatpush3.xpose.msk.msra.mxu1 %vm248_vm2, %v1339_v25  ;;  %4400 = vmatprep.mubr.msk.f32.mxu1 %vm4819_vm1, %v4818_v34 }
 0x8ad   :  { %4408 = vmatprep.subr.mxu1 %v4818_v34  ;;  %4405 = vmatprep.mubr.msk.f32.mxu0 %vm4819_vm1, %v4818_v34 }
 0x8af   :  { %4401 = vmatmul.mubr.msk.f32.vlgmr.msra.gmra.mxu1 %vm248_vm2, %v1337_v28 }
 0x8b0   :  { %4410 = vmatprep.mubr.msk.f32.mxu1 %vm4819_vm1, %v4818_v34 }
 0x967   :  { %v1178_v29 = vpop.f32.mrf.mxu0 }
 0x969   :  { %v4387_v30 = vpop.f32.mrf.mxu0 }
 0x96b   :  { %v1254_v32 = vpop.f32.mrf.mxu1  ;;  %v1332_v35 = vpop.f32.mrf.mxu0 }
 0x96c   :  { %v1414_v36 = vmul.f32 0.35355338, %v1332_v35 }
 0x96d   :  { %v4392_v38 = vpop.f32.mrf.mxu1  ;;  %v4397_v40 = vpop.f32.mrf.mxu0 }
 0x96e   :  { %v1416_v41 = vadd.f32 %v5005_v43, %v1414_v36 }
 0x96f   :  { %v1410_v42 = vpop.f32.mrf.mxu1 }
 0x970   :  { %v1415_v44 = vmul.f32 0.35355338, %v1410_v42  ;;  %v1418_v45 = vsel %vm248_vm2, %v1416_v41, -inf }
 0x971   :  { %1419 = vmax.xlane.f32.xlu0 %v1418_v45  ;;  %v4402_v46 = vpop.f32.mrf.mxu1 }
 0x972   :  { %v1417_v47 = vadd.f32 %v5011_v48, %v1415_v44  ;;  %v1764_v46 = vld [vmem:[%s5597_s10 + $0x10] sm:$0xff] }
 0x974   :  { %v1421_v49 = vsel %vm248_vm2, %v1417_v47, -inf }
 0x975   :  { %1422 = vmax.xlane.f32.xlu1 %v1421_v49  ;;  %v1762_v49 = vld [vmem:[%s5597_s10] sm:$0xff] }
 0x986   :  { %1516 = vrot.lane.b32.xlu1 %v4982_v37, %s5614_s27 }
 0x98a   :  { %1594 = vrot.lane.b32.xlu1 %v5088_v55, %s5610_s29 }
 0x98e   :  { %1596 = vrot.lane.b32.xlu1 %v5090_v57, %s5610_s29  ;;  %s5626_s29 = smov 24  }
 0x992   :  { %1604 = vrot.lane.b32.xlu1 %v1254_v32, %s5616_s4 }
 0x9fa   :  { %v1420_v50 = vpop.xlane.xlu0 %1419 }
 0x9fb   :  { %v1424_v51 = vsub.f32 %v1416_v41, %v1420_v50 }
 0x9fd   :  { %v1426_v52 = vmul.f32 1.442695, %v1424_v51 }
 0x9fe   :  { %v1423_v53 = vpop.xlane.xlu1 %1422 }
 0x9ff   :  { %4657 = vpow2.f32 %v1426_v52  ;;  %v1425_v54 = vsub.f32 %v1417_v47, %v1423_v53  ;;  %v1763_v47 = vld [vmem:[%s5597_s10 + $0x8] sm:$0xff] }
 0xa01   :  { %v1428_v56 = vmul.f32 1.442695, %v1425_v54 }
 0xa02   :  { %v1517_v58 = vpop.permute.xlu1 %1516 }
 0xa03   :  { %4659 = vpow2.f32 %v1428_v56  ;;  %4409 = vmatpush3.msra.mxu1 %v1517_v58 }
 0xa06   :  { %v1595_v10 = vpop.permute.xlu1 %1594 }
 0xa07   :  { %v1616_v15 = vsel %vm248_vm2, %v5048_v12, %v1595_v10  ;;  %v4107_v12 = vld [vmem:[%s5594_s7] ss:$0 sm:$0xff] }
 0xa0a   :  { %v1597_v11 = vpop.permute.xlu1 %1596 }
 0xa0b   :  { %v1617_v20 = vsel %vm248_vm2, %v5050_v14, %v1597_v11 }
 0xa0c   :  { %v4658_v37 = vpop.eup %4657 }
 0xa0d   :  { %v1430_v59 = vsel %vm248_vm2, %v4658_v37, 0.0 }
 0xa0e   :  { %1431 = vadd.xlane.f32.xlu0 %v1430_v59  ;;  %v1605_v16 = vpop.permute.xlu1 %1604 }
 0xa0f   :  { %v1620_v21 = vsel %vm1618_vm4, %v1617_v20, %v1605_v16 }
 0xa10   :  { %v4660_v55 = vpop.eup %4659 }
 0xa11   :  { %v1433_v57 = vsel %vm248_vm2, %v4660_v55, 0.0 }
 0xa12   :  { %1434 = vadd.xlane.f32.xlu0 %v1433_v57 }
 0xa28   :  { %1440 = vrot.lane.b32.xlu0 %v4984_v39, %s5614_s27  ;;  %v1627_v39 = vld [vmem:[%s5593_s6 + $0x18] sm:$0xff] }
 0xa2c   :  { %1602 = vrot.lane.b32.xlu0 %v1178_v29, %s5616_s4  ;;  %s5639_s4 = smov 112  }
 0xa97   :  { %v1432_v60 = vpop.xlane.xlu0 %1431 }
 0xa98   :  { %4661 = vrcp.f32 %v1432_v60 }
 0xa9b   :  { %v1435_v61 = vpop.xlane.xlu0 %1434 }
 0xa9c   :  { %4663 = vrcp.f32 %v1435_v61 }
 0xa9f   :  { %v1441_v62 = vpop.permute.xlu0 %1440 }
 0xaa0   :  { %4404 = vmatpush3.msra.mxu0 %v1441_v62 }
 0xaa1   :  { %4413 = vmatprep.subr.mxu0 %v1627_v39 }
 0xaa3   :  { %v1603_v13 = vpop.permute.xlu0 %1602 }
 0xaa4   :  { %v1619_v17 = vsel %vm1618_vm4, %v1616_v15, %v1603_v13 }
 0xaa5   :  { %v4662_v63 = vpop.eup %4661 }
 0xaa6   :  { %v1438_v0 = vmul.f32 %v4662_v63, %v4658_v37  ;;  %v4110_v37 = vld [vmem:[%s5595_s8] ss:$0 sm:$0xff] }
 0xaa8   :  { %4406 = vmatmul.mubr.msk.f32.vlgmr.msra.gmra.mxu0 %vm248_vm2, %v1438_v0 }
 0xaa9   :  { %v4664_v1 = vpop.eup %4663  ;;  %4414 = vmatpush3.msra.mxu0 %v1627_v39  ;;  %v1877_v39 = vld [vmem:[%s5599_s12 + $0x28] sm:$0xff] }
 0xaaa   :  { %v1439_v2 = vmul.f32 %v4664_v1, %v4660_v55  ;;  %4415 = vmatprep.subr.mxu0 %v1626_v3  ;;  %v4111_v55 = vld [vmem:[%s5596_s9] ss:$0 sm:$0xff]  ;;  %v1879_v1 = vld [vmem:[%s5599_s12 + $0x38] sm:$0xff] }
 0xaab   :  { %4416 = vmatpush3.msra.mxu0 %v1626_v3  ;;  %v1876_v3 = vld [vmem:[%s5599_s12 + $0x20] sm:$0xff] }
 0xaac   :  { %4411 = vmatmul.mubr.msk.f32.vlgmr.msra.gmra.mxu1 %vm248_vm2, %v1439_v2  ;;  %4417 = vmatprep.subr.mxu0 %v1625_v4  ;;  %v1878_v2 = vld [vmem:[%s5599_s12 + $0x30] sm:$0xff] }
 0xaad   :  { %4418 = vmatpush3.msra.mxu0 %v1625_v4  ;;  %v1875_v4 = vld [vmem:[%s5599_s12 + $0x18] sm:$0xff] }
 0xaae   :  { %4419 = vmatprep.subr.mxu0 %v1624_v5 }
 0xaaf   :  { %4420 = vmatpush3.msra.mxu0 %v1624_v5  ;;  %v1874_v5 = vld [vmem:[%s5599_s12 + $0x10] sm:$0xff] }
 0xab0   :  { %4435 = vmatprep.subr.mxu0 %v1879_v1 }
 0xb68   :  { %v1512_v6 = vpop.f32.mrf.mxu0 }
 0xb69   :  { %1610 = vrot.lane.b32.xlu0 %v1512_v6, %s5626_s29  ;;  %v1873_v6 = vld [vmem:[%s5599_s12 + $0x8] sm:$0xff] }
 0xb6a   :  { %v4407_v7 = vpop.f32.mrf.mxu0 }
 0xb6b   :  { %v1872_v7 = vld [vmem:[%s5599_s12] sm:$0xff] }
 0xb6c   :  { %v1588_v8 = vpop.f32.mrf.mxu1 }
 0xb6d   :  { %1612 = vrot.lane.b32.xlu1 %v1588_v8, %s5626_s29  ;;  %v4112_v8 = vld [vmem:[%s5598_s11] ss:$0 sm:$0xff] }
 0xb6e   :  { %v4412_v9 = vpop.f32.mrf.mxu1 }
 0xbdb   :  { %v1611_v18 = vpop.permute.xlu0 %1610 }
 0xbdc   :  { %v1622_v19 = vsel %vm1621_vm3, %v1619_v17, %v1611_v18 }
 0xbdd   :  { %4421 = vmatprep.mubr.msk.f32.mxu0 %vm109_vm0, %v1622_v19 }
 0xbdf   :  { %v1613_v22 = vpop.permute.xlu1 %1612 }
 0xbe0   :  { %v1623_v23 = vsel %vm1621_vm3, %v1620_v21, %v1613_v22 }
 0xbe1   :  { %4422 = vmatmul.mubr.msk.f32.vlgmr.msra.gmra.mxu0 %vm109_vm0, %v1623_v23 }
 0xbe2   :  { %4436 = vmatpush3.msra.mxu0 %v1879_v1  ;;  %v4118_v1 = vld [vmem:[%s5601_s14] ss:$0 sm:$0xff] }
 0xbe3   :  { %4437 = vmatprep.subr.mxu0 %v1878_v2 }
 0xbe4   :  { %4438 = vmatpush3.msra.mxu0 %v1878_v2 }
 0xbe5   :  { %4439 = vmatprep.subr.mxu0 %v1877_v39 }
 0xbe6   :  { %4440 = vmatpush3.msra.mxu0 %v1877_v39 }
 0xbe7   :  { %4441 = vmatprep.subr.mxu0 %v1876_v3 }
 0xbe8   :  { %4442 = vmatpush3.msra.mxu0 %v1876_v3 }
 0xbe9   :  { %4443 = vmatprep.subr.mxu0 %v1875_v4 }
 0xbea   :  { %4444 = vmatpush3.msra.mxu0 %v1875_v4 }
 0xbeb   :  { %4445 = vmatprep.subr.mxu0 %v1874_v5 }
 0xbec   :  { %4446 = vmatpush3.msra.mxu0 %v1874_v5  ;;  %v4119_v5 = vld [vmem:[%s5602_s15] ss:$0 sm:$0xff] }
 0xbed   :  { %4447 = vmatprep.subr.mxu0 %v1873_v6 }
 0xbee   :  { %4448 = vmatpush3.msra.mxu0 %v1873_v6 }
 0xbef   :  { %4449 = vmatprep.subr.mxu0 %v1872_v7 }
 0xbf0   :  { %4450 = vmatpush3.msra.mxu0 %v1872_v7 }
 0xbf1   :  { %4475 = vmatprep.subr.mxu0 %v4818_v34 }
 0xca1   :  { %v4423_v24 = vpop.f32.mrf.mxu0 }
 0xca2   :  { %v1713_v25 = vadd.f32 %v4423_v24, %v4107_v12 }
 0xca3   :  { %v1707_v26 = vpop.f32.mrf.mxu0 }
 0xca4   :  { %v1708_v27 = vadd.f32 %v4107_v12, %v1707_v26  ;;  %v1717_v28 = vadd.f32 %v1713_v25, %v4969_v33 }
 0xca6   :  { %v1723_v29 = vsel %vm109_vm0, %v1717_v28, 0.0  ;;  %v1716_v14 = vadd.f32 %v1708_v27, %v4965_v31  ;;  %v1765_v31 = vld [vmem:[%s5597_s10 + $0x18] sm:$0xff] }
 0xca7   :  { %1724 = vadd.xlane.f32.xlu1 %v1723_v29  ;;  %4424 = vmatprep.subr.mxu1 %v1765_v31 }
 0xca8   :  { %v1720_v30 = vsel %vm109_vm0, %v1716_v14, 0.0  ;;  %4425 = vmatpush3.msra.mxu1 %v1765_v31 }
 0xca9   :  { %1721 = vadd.xlane.f32.xlu0 %v1720_v30  ;;  %4426 = vmatprep.subr.mxu1 %v1764_v46 }
 0xcaa   :  { %4427 = vmatpush3.msra.mxu1 %v1764_v46 }
 0xcab   :  { %4428 = vmatprep.subr.mxu1 %v1763_v47 }
 0xcac   :  { %4429 = vmatpush3.msra.mxu1 %v1763_v47 }
 0xcad   :  { %4430 = vmatprep.subr.mxu1 %v1762_v49 }
 0xcae   :  { %4431 = vmatpush3.msra.mxu1 %v1762_v49 }
 0xd30   :  { %v1725_v32 = vpop.xlane.xlu1 %1724 }
 0xd31   :  { %v1727_v35 = vmul.f32 0.03125, %v1725_v32  ;;  %v4115_v32 = vld [vmem:[%s5600_s13] ss:$0 sm:$0xff] }
 0xd32   :  { %v1722_v36 = vpop.xlane.xlu0 %1721 }
 0xd33   :  { %v1726_v38 = vmul.f32 0.03125, %v1722_v36  ;;  %v1729_v40 = vsub.f32 %v1717_v28, %v1727_v35 }
 0xd35   :  { %v1728_v41 = vsub.f32 %v1716_v14, %v1726_v38  ;;  %v1731_v45 = vmul.f32 %v1729_v40, %v1729_v40 }
 0xd37   :  { %v1730_v42 = vmul.f32 %v1728_v41, %v1728_v41  ;;  %v1735_v33 = vsel %vm109_vm0, %v1731_v45, 0.0 }
 0xd39   :  { %v1732_v44 = vsel %vm109_vm0, %v1730_v42, 0.0 }
 0xd3a   :  { %1733 = vadd.xlane.f32.xlu0 %v1732_v44 }
 0xd3e   :  { %1736 = vadd.xlane.f32.xlu0 %v1735_v33 }
 0xdc3   :  { %v1734_v50 = vpop.xlane.xlu0 %1733 }
 0xdc4   :  { %v1738_v51 = vmul.f32 0.03125, %v1734_v50 }
 0xdc6   :  { %v1740_v52 = vadd.f32 1e-12, %v1738_v51 }
 0xdc7   :  { %v1737_v53 = vpop.xlane.xlu0 %1736 }
 0xdc8   :  { %4665 = vrsqrt.f32 %v1740_v52  ;;  %v1739_v54 = vmul.f32 0.03125, %v1737_v53 }
 0xdca   :  { %v1741_v56 = vadd.f32 1e-12, %v1739_v54 }
 0xdcc   :  { %4667 = vrsqrt.f32 %v1741_v56  ;;  %v4123_v56 = vld [vmem:[%s5636_s28 + $0x38] sm:$0xff] }
 0xdcd   :  { %4454 = vmatprep.subr.mxu1 %v4123_v56 }
 0xdd5   :  { %v4666_v58 = vpop.eup %4665 }
 0xdd6   :  { %v1744_v59 = vmul.f32 %v4666_v58, %v1728_v41  ;;  %v4122_v58 = vld [vmem:[%s5636_s28 + $0x30] sm:$0xff] }
 0xdd8   :  { %v1752_v57 = vmul.f32 %v4110_v37, %v1744_v59  ;;  %v4120_v59 = vld [vmem:[%s5636_s28 + $0x20] sm:$0xff] }
 0xdd9   :  { %v4668_v60 = vpop.eup %4667 }
 0xdda   :  { %v1745_v61 = vmul.f32 %v4668_v60, %v1729_v40  ;;  %v5197_v62 = vadd.f32 %v4111_v55, %v1752_v57 }
 0xddc   :  { %v1753_v63 = vmul.f32 %v4110_v37, %v1745_v61  ;;  %4432 = vmatprep.mubr.msk.f32.mxu1 %vm109_vm0, %v5197_v62  ;;  %v4121_v37 = vld [vmem:[%s5636_s28 + $0x28] sm:$0xff] }
 0xdde   :  { %v1761_v0 = vadd.f32 %v4111_v55, %v1753_v63 }
 0xde0   :  { %4433 = vmatmul.mubr.msk.f32.vlgmr.msra.gmra.mxu1 %vm109_vm0, %v1761_v0 }
 0xde1   :  { %4455 = vmatpush3.msra.mxu1 %v4123_v56 }
 0xde2   :  { %4456 = vmatprep.subr.mxu1 %v4122_v58 }
 0xde3   :  { %4457 = vmatpush3.msra.mxu1 %v4122_v58 }
 0xde4   :  { %4458 = vmatprep.subr.mxu1 %v4121_v37 }
 0xde5   :  { %4459 = vmatpush3.msra.mxu1 %v4121_v37 }
 0xde6   :  { %4460 = vmatprep.subr.mxu1 %v4120_v59 }
 0xde7   :  { %4461 = vmatpush3.msra.mxu1 %v4120_v59  ;;  %v5337_v59 = vld [vmem:[%s5637_s24] ss:$0 sm:$0xff] }
 0xde8   :  { %4465 = vmatprep.subr.mxu1 %v4818_v34 }
 0xea0   :  { %v4434_v9 = vpop.f32.mrf.mxu1 }
 0xea1   :  { %v1851_v10 = vadd.f32 %v4434_v9, %v4112_v8  ;;  %v4125_v9 = vld [vmem:[%s5592_s5 + $0x1] ss:$0 sm:$0xff] }
 0xea2   :  { %v1845_v11 = vpop.f32.mrf.mxu1 }
 0xea3   :  { %v1855_v13 = vmul.f32 %v1851_v10, %v1851_v10  ;;  %v1846_v15 = vadd.f32 %v4112_v8, %v1845_v11 }
 0xea5   :  { %v1857_v16 = vmul.f32 %v1855_v13, %v1851_v10  ;;  %v1854_v17 = vmul.f32 %v1846_v15, %v1846_v15 }
 0xea7   :  { %v1859_v18 = vmul.f32 0.044715, %v1857_v16  ;;  %v1856_v19 = vmul.f32 %v1854_v17, %v1846_v15 }
 0xea9   :  { %v1861_v20 = vadd.f32 %v1859_v18, %v1851_v10  ;;  %v1858_v21 = vmul.f32 0.044715, %v1856_v19 }
 0xeab   :  { %v1863_v22 = vmul.f32 0.7978846, %v1861_v20  ;;  %v1860_v23 = vadd.f32 %v1858_v21, %v1846_v15 }
 0xead   :  { %4669 = vtanh.f32 %v1863_v22  ;;  %v1862_v12 = vmul.f32 0.7978846, %v1860_v23 }
 0xeaf   :  { %4671 = vtanh.f32 %v1862_v12 }
 0xeba   :  { %v4670_v24 = vpop.eup %4669 }
 0xebb   :  { %v1867_v25 = vadd.f32 1.0, %v4670_v24 }
 0xebc   :  { %v4672_v26 = vpop.eup %4671 }
 0xebd   :  { %v1866_v27 = vadd.f32 1.0, %v4672_v26  ;;  %v1869_v28 = vmul.f32 0.5, %v1867_v25 }
 0xebf   :  { %v1868_v29 = vmul.f32 0.5, %v1866_v27  ;;  %v1871_v30 = vmul.f32 %v1869_v28, %v1851_v10 }
 0xec1   :  { %v1870_v14 = vmul.f32 %v1868_v29, %v1846_v15 }
 0xec3   :  { %4451 = vmatprep.mubr.msk.f32.mxu0 %vm1887_vm5, %v1870_v14 }
 0xec4   :  { %4452 = vmatmul.mubr.msk.f32.vlgmr.msra.gmra.mxu0 %vm1887_vm5, %v1871_v30 }
 0xec5   :  { %4477 = vmatprep.mubr.msk.f32.mxu0 %vm4819_vm1, %v4818_v34 }
 0xf84   :  { %v4453_v35 = vpop.f32.mrf.mxu0 }
 0xf85   :  { %v1966_v36 = vadd.f32 %v4453_v35, %v4115_v32 }
 0xf86   :  { %v1960_v38 = vpop.f32.mrf.mxu0 }
 0xf87   :  { %v1961_v40 = vadd.f32 %v4115_v32, %v1960_v38  ;;  %v1970_v41 = vadd.f32 %v1966_v36, %v1761_v0 }
 0xf89   :  { %v1976_v42 = vsel %vm109_vm0, %v1970_v41, 0.0  ;;  %v1969_v44 = vadd.f32 %v1961_v40, %v5197_v62 }
 0xf8a   :  { %1977 = vadd.xlane.f32.xlu1 %v1976_v42 }
 0xf8b   :  { %v1973_v45 = vsel %vm109_vm0, %v1969_v44, 0.0 }
 0xf8c   :  { %1974 = vadd.xlane.f32.xlu0 %v1973_v45 }
0x1013   :  { %v1978_v33 = vpop.xlane.xlu1 %1977 }
0x1014   :  { %v1980_v31 = vmul.f32 0.03125, %v1978_v33 }
0x1015   :  { %v1975_v46 = vpop.xlane.xlu0 %1974 }
0x1016   :  { %v1982_v47 = vsub.f32 %v1970_v41, %v1980_v31  ;;  %v1979_v49 = vmul.f32 0.03125, %v1975_v46 }
0x1018   :  { %v1981_v50 = vsub.f32 %v1969_v44, %v1979_v49  ;;  %v1984_v51 = vmul.f32 %v1982_v47, %v1982_v47 }
0x101a   :  { %v1988_v52 = vsel %vm109_vm0, %v1984_v51, 0.0  ;;  %v1983_v53 = vmul.f32 %v1981_v50, %v1981_v50 }
0x101b   :  { %1989 = vadd.xlane.f32.xlu1 %v1988_v52 }
0x101c   :  { %v1985_v54 = vsel %vm109_vm0, %v1983_v53, 0.0 }
0x101d   :  { %1986 = vadd.xlane.f32.xlu0 %v1985_v54 }
0x10a4   :  { %v1990_v55 = vpop.xlane.xlu1 %1989 }
0x10a5   :  { %v1992_v57 = vmul.f32 0.03125, %v1990_v55 }
0x10a6   :  { %v1987_v60 = vpop.xlane.xlu0 %1986 }
0x10a7   :  { %v1994_v61 = vadd.f32 1e-12, %v1992_v57  ;;  %v1991_v62 = vmul.f32 0.03125, %v1987_v60 }
0x10a9   :  { %4673 = vrsqrt.f32 %v1994_v61  ;;  %v1993_v63 = vadd.f32 1e-12, %v1991_v62 }
0x10ab   :  { %4675 = vrsqrt.f32 %v1993_v63  ;;  %v5344_v63 = vld [vmem:[%s5637_s24 + $0x1] ss:$0 sm:$0xff]  ;;  %s5640_s24 = smov 48  }
0x10b6   :  { %v4674_v0 = vpop.eup %4673 }
0x10b7   :  { %v1998_v2 = vmul.f32 %v4674_v0, %v1982_v47 }
0x10b8   :  { %v4676_v39 = vpop.eup %4675 }
0x10b9   :  { %v1997_v3 = vmul.f32 %v4676_v39, %v1981_v50  ;;  %v2006_v4 = vmul.f32 %v4118_v1, %v1998_v2 }
0x10bb   :  { %v2005_v6 = vmul.f32 %v4118_v1, %v1997_v3  ;;  %v5263_v8 = vadd.f32 %v4119_v5, %v2006_v4 }
0x10bd   :  { %v5261_v7 = vadd.f32 %v4119_v5, %v2005_v6 }
0x10bf   :  { %4462 = vmatprep.mubr.msk.f32.mxu1 %vm109_vm0, %v5261_v7 }
0x10c0   :  { %4463 = vmatmul.mubr.msk.f32.vlgmr.msra.gmra.mxu1 %vm109_vm0, %v5263_v8 }
0x10c1   :  { %4467 = vmatprep.mubr.msk.f32.mxu1 %vm4819_vm1, %v4818_v34 }
0x1180   :  { %v4464_v10 = vpop.f32.mrf.mxu1 }
0x1181   :  { %v5274_v11 = vadd.f32 %v4464_v10, %v4125_v9 }
0x1182   :  { %v2100_v13 = vpop.f32.mrf.mxu1 }
0x1183   :  { %v5276_v15 = vadd.f32 %v4125_v9, %v2100_v13  ;;  %2187 = vrot.lane.b32.xlu1 %v5274_v11, %s4820_s25 }
0x1185   :  { %2110 = vrot.lane.b32.xlu0 %v5276_v15, %s4820_s25 }
0x11f5   :  { %v2188_v17 = vpop.permute.xlu1 %2187 }
0x11f7   :  { %v2111_v16 = vpop.permute.xlu0 %2110 }
0x11f8   :  { %4466 = vmatpush3.xpose.msk.msra.mxu1 %vm248_vm2, %v2111_v16 }
0x11f9   :  { %4470 = vmatprep.subr.mxu1 %v4818_v34 }
0x11fb   :  { %4468 = vmatmul.mubr.msk.f32.vlgmr.msra.gmra.mxu1 %vm248_vm2, %v5276_v15 }
0x11fc   :  { %4471 = vmatpush3.xpose.msk.msra.mxu1 %vm248_vm2, %v2188_v17  ;;  %4472 = vmatprep.mubr.msk.f32.mxu1 %vm4819_vm1, %v4818_v34 }
0x11fd   :  { %4480 = vmatprep.subr.mxu1 %v4818_v34 }
0x11ff   :  { %4473 = vmatmul.mubr.msk.f32.vlgmr.msra.gmra.mxu1 %vm248_vm2, %v5274_v11 }
0x1200   :  { %4482 = vmatprep.mubr.msk.f32.mxu1 %vm4819_vm1, %v4818_v34 }
0x12bb   :  { %v2182_v18 = vpop.f32.mrf.mxu1 }
0x12bc   :  { %v2263_v19 = vmul.f32 0.35355338, %v2182_v18 }
0x12bd   :  { %v4469_v20 = vpop.f32.mrf.mxu1 }
0x12be   :  { %v2265_v21 = vadd.f32 %v5005_v43, %v2263_v19 }
0x12bf   :  { %v2259_v22 = vpop.f32.mrf.mxu1 }
0x12c0   :  { %v2264_v23 = vmul.f32 0.35355338, %v2259_v22  ;;  %v2267_v12 = vsel %vm248_vm2, %v2265_v21, -inf }
0x12c1   :  { %2268 = vmax.xlane.f32.xlu1 %v2267_v12  ;;  %v4474_v24 = vpop.f32.mrf.mxu1 }
0x12c2   :  { %v2266_v25 = vadd.f32 %v5011_v48, %v2264_v23 }
0x12c4   :  { %v2270_v26 = vsel %vm248_vm2, %v2266_v25, -inf }
0x12c5   :  { %2271 = vmax.xlane.f32.xlu0 %v2270_v26 }
0x12d2   :  { %2365 = vrot.lane.b32.xlu1 %v5274_v11, %s4821_s30 }
0x12d6   :  { %2443 = vrot.lane.b32.xlu1 %v5276_v15, %s4822_s0 }
0x12da   :  { %2521 = vrot.lane.b32.xlu1 %v5274_v11, %s4822_s0 }
0x134a   :  { %v2269_v43 = vpop.xlane.xlu1 %2268 }
0x134b   :  { %v2273_v27 = vsub.f32 %v2265_v21, %v2269_v43 }
0x134d   :  { %v2275_v28 = vmul.f32 1.442695, %v2273_v27 }
0x134e   :  { %v2366_v29 = vpop.permute.xlu1 %2365  ;;  %v2272_v14 = vpop.xlane.xlu0 %2271 }
0x134f   :  { %4677 = vpow2.f32 %v2275_v28  ;;  %v2274_v30 = vsub.f32 %v2266_v25, %v2272_v14  ;;  %4481 = vmatpush3.msra.mxu1 %v2366_v29 }
0x1350   :  { %4490 = vmatprep.subr.mxu1 %v4818_v34 }
0x1351   :  { %v2277_v48 = vmul.f32 1.442695, %v2274_v30 }
0x1352   :  { %v2444_v40 = vpop.permute.xlu1 %2443 }
0x1353   :  { %4679 = vpow2.f32 %v2277_v48 }
0x1356   :  { %v2522_v41 = vpop.permute.xlu1 %2521 }
0x135c   :  { %v4678_v32 = vpop.eup %4677 }
0x135d   :  { %v2279_v35 = vsel %vm248_vm2, %v4678_v32, 0.0 }
0x135e   :  { %2280 = vadd.xlane.f32.xlu0 %v2279_v35 }
0x1360   :  { %v4680_v36 = vpop.eup %4679 }
0x1361   :  { %v2282_v38 = vsel %vm248_vm2, %v4680_v36, 0.0 }
0x1362   :  { %2283 = vadd.xlane.f32.xlu1 %v2282_v38 }
0x1373   :  { %2519 = vrot.lane.b32.xlu1 %v5274_v11, %s4823_s21 }
0x1374   :  { %2289 = vrot.lane.b32.xlu0 %v5276_v15, %s4821_s30 }
0x1378   :  { %2441 = vrot.lane.b32.xlu0 %v5276_v15, %s4823_s21  ;;  %s5638_s21 = smov 80  }
0x13e7   :  { %v2281_v42 = vpop.xlane.xlu0 %2280 }
0x13e8   :  { %4681 = vrcp.f32 %v2281_v42 }
0x13eb   :  { %v2284_v44 = vpop.xlane.xlu1 %2283  ;;  %v2290_v45 = vpop.permute.xlu0 %2289 }
0x13ec   :  { %4683 = vrcp.f32 %v2284_v44  ;;  %4476 = vmatpush3.msra.mxu0 %v2290_v45 }
0x13ed   :  { %4485 = vmatprep.subr.mxu0 %v4818_v34 }
0x13ef   :  { %v2442_v49 = vpop.permute.xlu0 %2441  ;;  %v2520_v50 = vpop.permute.xlu1 %2519 }
0x13f5   :  { %v4682_v33 = vpop.eup %4681 }
0x13f6   :  { %v2287_v31 = vmul.f32 %v4682_v33, %v4678_v32 }
0x13f8   :  { %4478 = vmatmul.mubr.msk.f32.vlgmr.msra.gmra.mxu0 %vm248_vm2, %v2287_v31 }
0x13f9   :  { %v4684_v46 = vpop.eup %4683  ;;  %4486 = vmatpush3.xpose.msk.msra.mxu0 %vm248_vm2, %v2444_v40  ;;  %4487 = vmatprep.mubr.msk.f32.mxu0 %vm4819_vm1, %v4818_v34 }
0x13fa   :  { %v2288_v47 = vmul.f32 %v4684_v46, %v4680_v36  ;;  %4495 = vmatprep.subr.mxu0 %v4818_v34 }
0x13fc   :  { %4483 = vmatmul.mubr.msk.f32.vlgmr.msra.gmra.mxu1 %vm248_vm2, %v2288_v47  ;;  %4488 = vmatmul.mubr.msk.f32.vlgmr.msra.gmra.mxu0 %vm248_vm2, %v2442_v49 }
0x13fd   :  { %4491 = vmatpush3.xpose.msk.msra.mxu1 %vm248_vm2, %v2522_v41  ;;  %4492 = vmatprep.mubr.msk.f32.mxu1 %vm4819_vm1, %v4818_v34 }
0x13fe   :  { %4500 = vmatprep.subr.mxu1 %v4818_v34  ;;  %4497 = vmatprep.mubr.msk.f32.mxu0 %vm4819_vm1, %v4818_v34 }
0x1400   :  { %4493 = vmatmul.mubr.msk.f32.vlgmr.msra.gmra.mxu1 %vm248_vm2, %v2520_v50 }
0x1401   :  { %4502 = vmatprep.mubr.msk.f32.mxu1 %vm4819_vm1, %v4818_v34 }
0x14b8   :  { %v5330_v51 = vpop.f32.mrf.mxu0 }
0x14ba   :  { %v4479_v52 = vpop.f32.mrf.mxu0 }
0x14bc   :  { %v5332_v53 = vpop.f32.mrf.mxu1  ;;  %v2515_v54 = vpop.f32.mrf.mxu0 }
0x14bd   :  { %v2597_v56 = vmul.f32 0.35355338, %v2515_v54 }
0x14be   :  { %v4484_v58 = vpop.f32.mrf.mxu1  ;;  %v4489_v37 = vpop.f32.mrf.mxu0 }
0x14bf   :  { %v2599_v55 = vadd.f32 %v5337_v59, %v2597_v56 }
0x14c0   :  { %v2593_v57 = vpop.f32.mrf.mxu1 }
0x14c1   :  { %v2598_v60 = vmul.f32 0.35355338, %v2593_v57  ;;  %v2601_v61 = vsel %vm248_vm2, %v2599_v55, -inf }
0x14c2   :  { %2602 = vmax.xlane.f32.xlu0 %v2601_v61  ;;  %v4494_v62 = vpop.f32.mrf.mxu1 }
0x14c3   :  { %v2600_v0 = vadd.f32 %v5344_v63, %v2598_v60 }
0x14c5   :  { %v2604_v1 = vsel %vm248_vm2, %v2600_v0, -inf }
0x14c6   :  { %2605 = vmax.xlane.f32.xlu1 %v2604_v1 }
0x14d7   :  { %2699 = vrot.lane.b32.xlu1 %v5274_v11, %s4824_s1 }
0x14d8   :  { %2623 = vrot.lane.b32.xlu0 %v5276_v15, %s4824_s1  ;;  %s5641_s1 = smov 72  }
0x14db   :  { %2777 = vrot.lane.b32.xlu1 %v5276_v15, %s5638_s21 }
0x14df   :  { %2855 = vrot.lane.b32.xlu1 %v5274_v11, %s5638_s21  ;;  %s5646_s21 = smov 24  }
0x14e3   :  { %2853 = vrot.lane.b32.xlu1 %v5274_v11, %s5639_s4 }
0x154b   :  { %v2603_v2 = vpop.xlane.xlu0 %2602 }
0x154c   :  { %v2607_v39 = vsub.f32 %v2599_v55, %v2603_v2 }
0x154e   :  { %v2609_v3 = vmul.f32 1.442695, %v2607_v39 }
0x154f   :  { %v2624_v4 = vpop.permute.xlu0 %2623  ;;  %v2606_v5 = vpop.xlane.xlu1 %2605 }
0x1550   :  { %4685 = vpow2.f32 %v2609_v3  ;;  %v2608_v6 = vsub.f32 %v2600_v0, %v2606_v5  ;;  %4496 = vmatpush3.msra.mxu0 %v2624_v4 }
0x1551   :  { %4505 = vmatprep.subr.mxu0 %v4818_v34 }
0x1552   :  { %v2611_v9 = vmul.f32 1.442695, %v2608_v6 }
0x1553   :  { %v2700_v10 = vpop.permute.xlu1 %2699 }
0x1554   :  { %4687 = vpow2.f32 %v2611_v9  ;;  %4501 = vmatpush3.msra.mxu1 %v2700_v10 }
0x1555   :  { %4510 = vmatprep.subr.mxu1 %v4818_v34 }
0x1557   :  { %v2778_v21 = vpop.permute.xlu1 %2777 }
0x155b   :  { %v2856_v24 = vpop.permute.xlu1 %2855 }
0x155d   :  { %v4686_v13 = vpop.eup %4685 }
0x155e   :  { %v2613_v16 = vsel %vm248_vm2, %v4686_v13, 0.0 }
0x155f   :  { %2614 = vadd.xlane.f32.xlu0 %v2613_v16  ;;  %v2854_v43 = vpop.permute.xlu1 %2853 }
0x1561   :  { %v4688_v17 = vpop.eup %4687 }
0x1562   :  { %v2616_v18 = vsel %vm248_vm2, %v4688_v17, 0.0 }
0x1563   :  { %2617 = vadd.xlane.f32.xlu0 %v2616_v18 }
0x1579   :  { %2775 = vrot.lane.b32.xlu0 %v5276_v15, %s5639_s4 }
0x15e8   :  { %v2615_v19 = vpop.xlane.xlu0 %2614 }
0x15e9   :  { %4689 = vrcp.f32 %v2615_v19 }
0x15ec   :  { %v2618_v20 = vpop.xlane.xlu0 %2617 }
0x15ed   :  { %4691 = vrcp.f32 %v2618_v20 }
0x15f0   :  { %v2776_v26 = vpop.permute.xlu0 %2775 }
0x15f6   :  { %v4690_v22 = vpop.eup %4689 }
0x15f7   :  { %v2621_v23 = vmul.f32 %v4690_v22, %v4686_v13 }
0x15f9   :  { %4498 = vmatmul.mubr.msk.f32.vlgmr.msra.gmra.mxu0 %vm248_vm2, %v2621_v23 }
0x15fa   :  { %v4692_v12 = vpop.eup %4691  ;;  %4506 = vmatpush3.xpose.msk.msra.mxu0 %vm248_vm2, %v2778_v21  ;;  %4507 = vmatprep.mubr.msk.f32.mxu0 %vm4819_vm1, %v4818_v34 }
0x15fb   :  { %v2622_v25 = vmul.f32 %v4692_v12, %v4688_v17  ;;  %4515 = vmatprep.subr.mxu0 %v4818_v34 }
0x15fd   :  { %4503 = vmatmul.mubr.msk.f32.vlgmr.msra.gmra.mxu1 %vm248_vm2, %v2622_v25  ;;  %4508 = vmatmul.mubr.msk.f32.vlgmr.msra.gmra.mxu0 %vm248_vm2, %v2776_v26 }
0x15fe   :  { %4511 = vmatpush3.xpose.msk.msra.mxu1 %vm248_vm2, %v2856_v24  ;;  %4512 = vmatprep.mubr.msk.f32.mxu1 %vm4819_vm1, %v4818_v34 }
0x15ff   :  { %4520 = vmatprep.subr.mxu1 %v4818_v34  ;;  %4517 = vmatprep.mubr.msk.f32.mxu0 %vm4819_vm1, %v4818_v34 }
0x1601   :  { %4513 = vmatmul.mubr.msk.f32.vlgmr.msra.gmra.mxu1 %vm248_vm2, %v2854_v43 }
0x1602   :  { %4522 = vmatprep.mubr.msk.f32.mxu1 %vm4819_vm1, %v4818_v34 }
0x16b9   :  { %v5380_v27 = vpop.f32.mrf.mxu0 }
0x16bb   :  { %v4499_v28 = vpop.f32.mrf.mxu0 }
0x16bd   :  { %v5382_v29 = vpop.f32.mrf.mxu1  ;;  %v2849_v14 = vpop.f32.mrf.mxu0 }
0x16be   :  { %v2931_v30 = vmul.f32 0.35355338, %v2849_v14 }
0x16bf   :  { %v4504_v48 = vpop.f32.mrf.mxu1  ;;  %v4509_v32 = vpop.f32.mrf.mxu0 }
0x16c0   :  { %v2933_v35 = vadd.f32 %v5337_v59, %v2931_v30 }
0x16c1   :  { %v2927_v36 = vpop.f32.mrf.mxu1 }
0x16c2   :  { %v2932_v38 = vmul.f32 0.35355338, %v2927_v36  ;;  %v2935_v40 = vsel %vm248_vm2, %v2933_v35, -inf }
0x16c3   :  { %2936 = vmax.xlane.f32.xlu0 %v2935_v40  ;;  %v4514_v41 = vpop.f32.mrf.mxu1  ;;  %v4154_v40 = vld [vmem:[%s5593_s6 + $0x30] sm:$0xff] }
0x16c4   :  { %v2934_v42 = vadd.f32 %v5344_v63, %v2932_v38  ;;  %v4153_v41 = vld [vmem:[%s5593_s6 + $0x28] sm:$0xff] }
0x16c6   :  { %v2938_v44 = vsel %vm248_vm2, %v2934_v42, -inf }
0x16c7   :  { %2939 = vmax.xlane.f32.xlu1 %v2938_v44 }
0x16d8   :  { %3033 = vrot.lane.b32.xlu1 %v5274_v11, %s5640_s24 }
0x16d9   :  { %2957 = vrot.lane.b32.xlu0 %v5276_v15, %s5640_s24 }
0x16dc   :  { %3111 = vrot.lane.b32.xlu1 %v5276_v15, %s5641_s1 }
0x16e0   :  { %3189 = vrot.lane.b32.xlu1 %v5274_v11, %s5641_s1 }
0x16e4   :  { %3187 = vrot.lane.b32.xlu1 %v5274_v11, %s5642_s23 }
0x174c   :  { %v2937_v45 = vpop.xlane.xlu0 %2936 }
0x174d   :  { %v2941_v33 = vsub.f32 %v2933_v35, %v2937_v45 }
0x174f   :  { %v2943_v31 = vmul.f32 1.442695, %v2941_v33 }
0x1750   :  { %v2958_v46 = vpop.permute.xlu0 %2957  ;;  %v2940_v47 = vpop.xlane.xlu1 %2939 }
0x1751   :  { %4693 = vpow2.f32 %v2943_v31  ;;  %v2942_v49 = vsub.f32 %v2934_v42, %v2940_v47  ;;  %4516 = vmatpush3.msra.mxu0 %v2958_v46  ;;  %v4152_v42 = vld [vmem:[%s5593_s6 + $0x20] sm:$0xff] }
0x1752   :  { %4525 = vmatprep.subr.mxu0 %v4818_v34 }
0x1753   :  { %v2945_v50 = vmul.f32 1.442695, %v2942_v49 }
0x1754   :  { %v3034_v52 = vpop.permute.xlu1 %3033 }
0x1755   :  { %4695 = vpow2.f32 %v2945_v50  ;;  %4521 = vmatpush3.msra.mxu1 %v3034_v52 }
0x1756   :  { %4530 = vmatprep.subr.mxu1 %v4818_v34 }
0x1758   :  { %v3112_v60 = vpop.permute.xlu1 %3111 }
0x175c   :  { %v3190_v1 = vpop.permute.xlu1 %3189 }
0x175e   :  { %v4694_v54 = vpop.eup %4693 }
0x175f   :  { %v2947_v56 = vsel %vm248_vm2, %v4694_v54, 0.0 }
0x1760   :  { %2948 = vadd.xlane.f32.xlu0 %v2947_v56  ;;  %v3188_v3 = vpop.permute.xlu1 %3187 }
0x1762   :  { %v4696_v58 = vpop.eup %4695 }
0x1763   :  { %v2950_v37 = vsel %vm248_vm2, %v4696_v58, 0.0 }
0x1764   :  { %2951 = vadd.xlane.f32.xlu0 %v2950_v37 }
0x177a   :  { %3109 = vrot.lane.b32.xlu0 %v5276_v15, %s5642_s23 }
0x17e9   :  { %v2949_v55 = vpop.xlane.xlu0 %2948 }
0x17ea   :  { %4697 = vrcp.f32 %v2949_v55 }
0x17ed   :  { %v2952_v57 = vpop.xlane.xlu0 %2951 }
0x17ee   :  { %4699 = vrcp.f32 %v2952_v57 }
0x17f1   :  { %v3110_v39 = vpop.permute.xlu0 %3109 }
0x17f7   :  { %v4698_v61 = vpop.eup %4697 }
0x17f8   :  { %v2955_v62 = vmul.f32 %v4698_v61, %v4694_v54 }
0x17fa   :  { %4518 = vmatmul.mubr.msk.f32.vlgmr.msra.gmra.mxu0 %vm248_vm2, %v2955_v62 }
0x17fb   :  { %v4700_v0 = vpop.eup %4699  ;;  %4526 = vmatpush3.xpose.msk.msra.mxu0 %vm248_vm2, %v3112_v60  ;;  %4527 = vmatprep.mubr.msk.f32.mxu0 %vm4819_vm1, %v4818_v34 }
0x17fc   :  { %v2956_v2 = vmul.f32 %v4700_v0, %v4696_v58  ;;  %4535 = vmatprep.subr.mxu0 %v4818_v34 }
0x17fe   :  { %4523 = vmatmul.mubr.msk.f32.vlgmr.msra.gmra.mxu1 %vm248_vm2, %v2956_v2  ;;  %4528 = vmatmul.mubr.msk.f32.vlgmr.msra.gmra.mxu0 %vm248_vm2, %v3110_v39 }
0x17ff   :  { %4531 = vmatpush3.xpose.msk.msra.mxu1 %vm248_vm2, %v3190_v1  ;;  %4532 = vmatprep.mubr.msk.f32.mxu1 %vm4819_vm1, %v4818_v34 }
0x1800   :  { %4540 = vmatprep.subr.mxu1 %v4818_v34  ;;  %4537 = vmatprep.mubr.msk.f32.mxu0 %vm4819_vm1, %v4818_v34 }
0x1802   :  { %4533 = vmatmul.mubr.msk.f32.vlgmr.msra.gmra.mxu1 %vm248_vm2, %v3188_v3 }
0x1803   :  { %4542 = vmatprep.mubr.msk.f32.mxu1 %vm4819_vm1, %v4818_v34 }
0x18ba   :  { %v3029_v4 = vpop.f32.mrf.mxu0 }
0x18bc   :  { %v4519_v5 = vpop.f32.mrf.mxu0 }
0x18be   :  { %v3105_v6 = vpop.f32.mrf.mxu1  ;;  %v3183_v9 = vpop.f32.mrf.mxu0 }
0x18bf   :  { %v3265_v10 = vmul.f32 0.35355338, %v3183_v9 }
0x18c0   :  { %v4524_v13 = vpop.f32.mrf.mxu1  ;;  %v4529_v16 = vpop.f32.mrf.mxu0 }
0x18c1   :  { %v3267_v17 = vadd.f32 %v5337_v59, %v3265_v10 }
0x18c2   :  { %v3261_v18 = vpop.f32.mrf.mxu1 }
0x18c3   :  { %v3266_v19 = vmul.f32 0.35355338, %v3261_v18  ;;  %v3269_v20 = vsel %vm248_vm2, %v3267_v17, -inf }
0x18c4   :  { %3270 = vmax.xlane.f32.xlu0 %v3269_v20  ;;  %v4534_v21 = vpop.f32.mrf.mxu1  ;;  %v4165_v20 = vld [vmem:[%s5597_s10 + $0x28] sm:$0xff] }
0x18c5   :  { %v3268_v22 = vadd.f32 %v5344_v63, %v3266_v19  ;;  %v4166_v19 = vld [vmem:[%s5597_s10 + $0x30] sm:$0xff]  ;;  %v4164_v21 = vld [vmem:[%s5597_s10 + $0x20] sm:$0xff] }
0x18c7   :  { %v3272_v23 = vsel %vm248_vm2, %v3268_v22, -inf }
0x18c8   :  { %3273 = vmax.xlane.f32.xlu1 %v3272_v23 }
0x18d9   :  { %3367 = vrot.lane.b32.xlu1 %v5274_v11, %s5643_s2 }
0x18dd   :  { %3445 = vrot.lane.b32.xlu1 %v5380_v27, %s5644_s22 }
0x18e1   :  { %3447 = vrot.lane.b32.xlu1 %v5382_v29, %s5644_s22 }
0x18e5   :  { %3455 = vrot.lane.b32.xlu1 %v3105_v6, %s5645_s3 }
0x194d   :  { %v3271_v59 = vpop.xlane.xlu0 %3270 }
0x194e   :  { %v3275_v12 = vsub.f32 %v3267_v17, %v3271_v59 }
0x1950   :  { %v3277_v24 = vmul.f32 1.442695, %v3275_v12 }
0x1951   :  { %v3274_v25 = vpop.xlane.xlu1 %3273 }
0x1952   :  { %4701 = vpow2.f32 %v3277_v24  ;;  %v3276_v63 = vsub.f32 %v3268_v22, %v3274_v25 }
0x1954   :  { %v3279_v26 = vmul.f32 1.442695, %v3276_v63 }
0x1955   :  { %v3368_v43 = vpop.permute.xlu1 %3367 }
0x1956   :  { %4703 = vpow2.f32 %v3279_v26  ;;  %4541 = vmatpush3.msra.mxu1 %v3368_v43  ;;  %v4162_v26 = vld [vmem:[%s5595_s8 + $0x1] ss:$0 sm:$0xff] }
0x1959   :  { %v3446_v46 = vpop.permute.xlu1 %3445 }
0x195a   :  { %v3467_v50 = vsel %vm248_vm2, %v5330_v51, %v3446_v46  ;;  %v4157_v51 = vld [vmem:[%s5594_s7 + $0x1] ss:$0 sm:$0xff] }
0x195d   :  { %v3448_v47 = vpop.permute.xlu1 %3447 }
0x195e   :  { %v3468_v37 = vsel %vm248_vm2, %v5332_v53, %v3448_v47 }
0x195f   :  { %v4702_v28 = vpop.eup %4701 }
0x1960   :  { %v3281_v11 = vsel %vm248_vm2, %v4702_v28, 0.0 }
0x1961   :  { %3282 = vadd.xlane.f32.xlu0 %v3281_v11  ;;  %v3456_v52 = vpop.permute.xlu1 %3455 }
0x1962   :  { %v3470_v55 = vsel %vm1618_vm4, %v3468_v37, %v3456_v52 }
0x1963   :  { %v4704_v27 = vpop.eup %4703 }
0x1964   :  { %v3284_v14 = vsel %vm248_vm2, %v4704_v27, 0.0 }
0x1965   :  { %3285 = vadd.xlane.f32.xlu0 %v3284_v14 }
0x197b   :  { %3291 = vrot.lane.b32.xlu0 %v5276_v15, %s5643_s2  ;;  %v4155_v15 = vld [vmem:[%s5593_s6 + $0x38] sm:$0xff] }
0x197f   :  { %3453 = vrot.lane.b32.xlu0 %v3029_v4, %s5645_s3 }
0x19ea   :  { %v3283_v29 = vpop.xlane.xlu0 %3282 }
0x19eb   :  { %4705 = vrcp.f32 %v3283_v29 }
0x19ee   :  { %v3286_v30 = vpop.xlane.xlu0 %3285 }
0x19ef   :  { %4707 = vrcp.f32 %v3286_v30 }
0x19f2   :  { %v3292_v48 = vpop.permute.xlu0 %3291 }
0x19f3   :  { %4536 = vmatpush3.msra.mxu0 %v3292_v48 }
0x19f4   :  { %4545 = vmatprep.subr.mxu0 %v4155_v15 }
0x19f6   :  { %v3454_v49 = vpop.permute.xlu0 %3453 }
0x19f7   :  { %v3469_v54 = vsel %vm1618_vm4, %v3467_v50, %v3454_v49 }
0x19f8   :  { %v4706_v32 = vpop.eup %4705 }
0x19f9   :  { %v3289_v35 = vmul.f32 %v4706_v32, %v4702_v28  ;;  %v4163_v28 = vld [vmem:[%s5596_s9 + $0x1] ss:$0 sm:$0xff]  ;;  %v4179_v32 = vld [vmem:[%s5599_s12 + $0x78] sm:$0xff] }
0x19fb   :  { %4538 = vmatmul.mubr.msk.f32.vlgmr.msra.gmra.mxu0 %vm248_vm2, %v3289_v35  ;;  %v4178_v35 = vld [vmem:[%s5599_s12 + $0x70] sm:$0xff] }
0x19fc   :  { %v4708_v36 = vpop.eup %4707  ;;  %4546 = vmatpush3.msra.mxu0 %v4155_v15  ;;  %v4175_v15 = vld [vmem:[%s5599_s12 + $0x58] sm:$0xff] }
0x19fd   :  { %v3290_v38 = vmul.f32 %v4708_v36, %v4704_v27  ;;  %4547 = vmatprep.subr.mxu0 %v4154_v40  ;;  %v4177_v36 = vld [vmem:[%s5599_s12 + $0x68] sm:$0xff] }
0x19fe   :  { %4548 = vmatpush3.msra.mxu0 %v4154_v40  ;;  %v4174_v40 = vld [vmem:[%s5599_s12 + $0x50] sm:$0xff] }
0x19ff   :  { %4543 = vmatmul.mubr.msk.f32.vlgmr.msra.gmra.mxu1 %vm248_vm2, %v3290_v38  ;;  %4549 = vmatprep.subr.mxu0 %v4153_v41  ;;  %v4176_v38 = vld [vmem:[%s5599_s12 + $0x60] sm:$0xff] }
0x1a00   :  { %4550 = vmatpush3.msra.mxu0 %v4153_v41  ;;  %v4173_v41 = vld [vmem:[%s5599_s12 + $0x48] sm:$0xff] }
0x1a01   :  { %4551 = vmatprep.subr.mxu0 %v4152_v42 }
0x1a02   :  { %4552 = vmatpush3.msra.mxu0 %v4152_v42  ;;  %v4172_v42 = vld [vmem:[%s5599_s12 + $0x40] sm:$0xff] }
0x1a03   :  { %4567 = vmatprep.subr.mxu0 %v4179_v32 }
0x1abb   :  { %v3363_v44 = vpop.f32.mrf.mxu0 }
0x1abc   :  { %3461 = vrot.lane.b32.xlu0 %v3363_v44, %s5646_s21  ;;  %v4169_v44 = vld [vmem:[%s5598_s11 + $0x1] ss:$0 sm:$0xff] }
0x1abd   :  { %v4539_v45 = vpop.f32.mrf.mxu0 }
0x1abf   :  { %v3439_v33 = vpop.f32.mrf.mxu1 }
0x1ac0   :  { %3463 = vrot.lane.b32.xlu1 %v3439_v33, %s5646_s21 }
0x1ac1   :  { %v4544_v31 = vpop.f32.mrf.mxu1 }
0x1b2e   :  { %v3462_v56 = vpop.permute.xlu0 %3461 }
0x1b2f   :  { %v3471_v58 = vsel %vm1621_vm3, %v3469_v54, %v3462_v56 }
0x1b30   :  { %4553 = vmatprep.mubr.msk.f32.mxu0 %vm109_vm0, %v3471_v58 }
0x1b32   :  { %v3464_v57 = vpop.permute.xlu1 %3463 }
0x1b33   :  { %v3472_v60 = vsel %vm1621_vm3, %v3470_v55, %v3464_v57 }
0x1b34   :  { %4554 = vmatmul.mubr.msk.f32.vlgmr.msra.gmra.mxu0 %vm109_vm0, %v3472_v60 }
0x1b35   :  { %4568 = vmatpush3.msra.mxu0 %v4179_v32 }
0x1b36   :  { %4569 = vmatprep.subr.mxu0 %v4178_v35 }
0x1b37   :  { %4570 = vmatpush3.msra.mxu0 %v4178_v35  ;;  %v4187_v35 = vld [vmem:[%s5602_s15 + $0x1] ss:$0 sm:$0xff] }
0x1b38   :  { %4571 = vmatprep.subr.mxu0 %v4177_v36 }
0x1b39   :  { %4572 = vmatpush3.msra.mxu0 %v4177_v36 }
0x1b3a   :  { %4573 = vmatprep.subr.mxu0 %v4176_v38 }
0x1b3b   :  { %4574 = vmatpush3.msra.mxu0 %v4176_v38 }
0x1b3c   :  { %4575 = vmatprep.subr.mxu0 %v4175_v15 }
0x1b3d   :  { %4576 = vmatpush3.msra.mxu0 %v4175_v15 }
0x1b3e   :  { %4577 = vmatprep.subr.mxu0 %v4174_v40 }
0x1b3f   :  { %4578 = vmatpush3.msra.mxu0 %v4174_v40 }
0x1b40   :  { %4579 = vmatprep.subr.mxu0 %v4173_v41 }
0x1b41   :  { %4580 = vmatpush3.msra.mxu0 %v4173_v41 }
0x1b42   :  { %4581 = vmatprep.subr.mxu0 %v4172_v42 }
0x1b43   :  { %4582 = vmatpush3.msra.mxu0 %v4172_v42 }
0x1bf4   :  { %v4555_v61 = vpop.f32.mrf.mxu0 }
0x1bf5   :  { %v3564_v62 = vadd.f32 %v4555_v61, %v4157_v51 }
0x1bf6   :  { %v3558_v0 = vpop.f32.mrf.mxu0 }
0x1bf7   :  { %v3568_v1 = vadd.f32 %v3564_v62, %v5263_v8  ;;  %v3559_v2 = vadd.f32 %v4157_v51, %v3558_v0 }
0x1bf9   :  { %v3567_v39 = vadd.f32 %v3559_v2, %v5261_v7  ;;  %v3576_v53 = vsel %vm109_vm0, %v3568_v1, 0.0  ;;  %v4167_v7 = vld [vmem:[%s5597_s10 + $0x38] sm:$0xff] }
0x1bfa   :  { %3577 = vadd.xlane.f32.xlu1 %v3576_v53  ;;  %4556 = vmatprep.subr.mxu1 %v4167_v7  ;;  %v4181_v53 = vld [vmem:[%s5600_s13 + $0x1] ss:$0 sm:$0xff] }
0x1bfb   :  { %v3573_v3 = vsel %vm109_vm0, %v3567_v39, 0.0  ;;  %4557 = vmatpush3.msra.mxu1 %v4167_v7 }
0x1bfc   :  { %3574 = vadd.xlane.f32.xlu0 %v3573_v3  ;;  %4558 = vmatprep.subr.mxu1 %v4166_v19 }
0x1bfd   :  { %4559 = vmatpush3.msra.mxu1 %v4166_v19 }
0x1bfe   :  { %4560 = vmatprep.subr.mxu1 %v4165_v20 }
0x1bff   :  { %4561 = vmatpush3.msra.mxu1 %v4165_v20 }
0x1c00   :  { %4562 = vmatprep.subr.mxu1 %v4164_v21 }
0x1c01   :  { %4563 = vmatpush3.msra.mxu1 %v4164_v21 }
0x1c02   :  { %4586 = vmatprep.subr.mxu1 %v4818_v34 }
0x1c83   :  { %v3578_v4 = vpop.xlane.xlu1 %3577 }
0x1c84   :  { %v3580_v5 = vmul.f32 0.03125, %v3578_v4 }
0x1c85   :  { %v3575_v6 = vpop.xlane.xlu0 %3574 }
0x1c86   :  { %v3579_v9 = vmul.f32 0.03125, %v3575_v6  ;;  %v3582_v10 = vsub.f32 %v3568_v1, %v3580_v5 }
0x1c88   :  { %v3581_v13 = vsub.f32 %v3567_v39, %v3579_v9  ;;  %v3584_v18 = vmul.f32 %v3582_v10, %v3582_v10 }
0x1c8a   :  { %v3583_v16 = vmul.f32 %v3581_v13, %v3581_v13  ;;  %v3588_v8 = vsel %vm109_vm0, %v3584_v18, 0.0 }
0x1c8c   :  { %v3585_v17 = vsel %vm109_vm0, %v3583_v16, 0.0 }
0x1c8d   :  { %3586 = vadd.xlane.f32.xlu0 %v3585_v17 }
0x1c91   :  { %3589 = vadd.xlane.f32.xlu0 %v3588_v8 }
0x1d16   :  { %v3587_v22 = vpop.xlane.xlu0 %3586 }
0x1d17   :  { %v3591_v23 = vmul.f32 0.03125, %v3587_v22 }
0x1d19   :  { %v3593_v59 = vadd.f32 1e-12, %v3591_v23 }
0x1d1a   :  { %v3590_v12 = vpop.xlane.xlu0 %3589 }
0x1d1b   :  { %4709 = vrsqrt.f32 %v3593_v59  ;;  %v3592_v24 = vmul.f32 0.03125, %v3590_v12  ;;  %v3881_v12 = vld [vmem:[%s5603_s16 + $0x18] sm:$0xff] }
0x1d1d   :  { %v3594_v25 = vadd.f32 1e-12, %v3592_v24  ;;  %v3880_v24 = vld [vmem:[%s5603_s16 + $0x10] sm:$0xff] }
0x1d1f   :  { %4711 = vrsqrt.f32 %v3594_v25  ;;  %v3879_v25 = vld [vmem:[%s5603_s16 + $0x8] sm:$0xff] }
0x1d28   :  { %v4710_v63 = vpop.eup %4709 }
0x1d29   :  { %v3597_v43 = vmul.f32 %v4710_v63, %v3581_v13  ;;  %v3878_v63 = vld [vmem:[%s5603_s16] sm:$0xff] }
0x1d2b   :  { %v3605_v11 = vmul.f32 %v4162_v26, %v3597_v43 }
0x1d2c   :  { %v4712_v27 = vpop.eup %4711 }
0x1d2d   :  { %v3598_v14 = vmul.f32 %v4712_v27, %v3582_v10  ;;  %v5490_v29 = vadd.f32 %v4163_v28, %v3605_v11 }
0x1d2f   :  { %v3606_v30 = vmul.f32 %v4162_v26, %v3598_v14  ;;  %4564 = vmatprep.mubr.msk.f32.mxu1 %vm109_vm0, %v5490_v29 }
0x1d31   :  { %v3614_v48 = vadd.f32 %v4163_v28, %v3606_v30  ;;  %v4186_v30 = vld [vmem:[%s5601_s14 + $0x1] ss:$0 sm:$0xff] }
0x1d33   :  { %4565 = vmatmul.mubr.msk.f32.vlgmr.msra.gmra.mxu1 %vm109_vm0, %v3614_v48 }
0x1d34   :  { %4594 = vmatprep.mubr.msk.f32.mxu1 %vm4819_vm1, %v4818_v34  ;;  %4587 = vmatpush3.msra.mxu1 %v3881_v12 }
0x1d35   :  { %4588 = vmatprep.subr.mxu1 %v4818_v34 }
0x1d36   :  { %4589 = vmatpush3.msra.mxu1 %v3880_v24 }
0x1d37   :  { %4590 = vmatprep.subr.mxu1 %v4818_v34 }
0x1d38   :  { %4591 = vmatpush3.msra.mxu1 %v3879_v25 }
0x1d39   :  { %4592 = vmatprep.subr.mxu1 %v4818_v34 }
0x1d3a   :  { %4593 = vmatpush3.msra.mxu1 %v3878_v63 }
0x1d3b   :  { %4597 = vmatprep.subr.mxu1 %v4818_v34 }
0x1df3   :  { %v4566_v45 = vpop.f32.mrf.mxu1 }
0x1df4   :  { %v3706_v33 = vadd.f32 %v4566_v45, %v4169_v44 }
0x1df5   :  { %v3700_v31 = vpop.f32.mrf.mxu1 }
0x1df6   :  { %v3710_v46 = vmul.f32 %v3706_v33, %v3706_v33  ;;  %v3701_v47 = vadd.f32 %v4169_v44, %v3700_v31  ;;  %v3966_v44 = vld [vmem:[%s5605_s18 + $0x18] sm:$0xff]  ;;  %v3964_v31 = vld [vmem:[%s5605_s18 + $0x8] sm:$0xff] }
0x1df8   :  { %v3712_v49 = vmul.f32 %v3710_v46, %v3706_v33  ;;  %v3709_v50 = vmul.f32 %v3701_v47, %v3701_v47  ;;  %v3963_v46 = vld [vmem:[%s5605_s18] sm:$0xff] }
0x1dfa   :  { %v3714_v52 = vmul.f32 0.044715, %v3712_v49  ;;  %v3711_v54 = vmul.f32 %v3709_v50, %v3701_v47 }
0x1dfc   :  { %v3716_v56 = vadd.f32 %v3714_v52, %v3706_v33  ;;  %v3713_v58 = vmul.f32 0.044715, %v3711_v54 }
0x1dfe   :  { %v3718_v37 = vmul.f32 0.7978846, %v3716_v56  ;;  %v3715_v55 = vadd.f32 %v3713_v58, %v3701_v47  ;;  %v4190_v56 = vld [vmem:[%s5606_s19] ss:$0 sm:$0xff] }
0x1e00   :  { %4713 = vtanh.f32 %v3718_v37  ;;  %v3717_v57 = vmul.f32 0.7978846, %v3715_v55 }
0x1e02   :  { %4715 = vtanh.f32 %v3717_v57 }
0x1e0d   :  { %v4714_v60 = vpop.eup %4713 }
0x1e0e   :  { %v3722_v51 = vadd.f32 1.0, %v4714_v60 }
0x1e0f   :  { %v4716_v61 = vpop.eup %4715 }
0x1e10   :  { %v3721_v62 = vadd.f32 1.0, %v4716_v61  ;;  %v3724_v0 = vmul.f32 0.5, %v3722_v51 }
0x1e12   :  { %v3723_v1 = vmul.f32 0.5, %v3721_v62  ;;  %v3726_v39 = vmul.f32 %v3724_v0, %v3706_v33  ;;  %v3965_v33 = vld [vmem:[%s5605_s18 + $0x10] sm:$0xff] }
0x1e14   :  { %v3725_v2 = vmul.f32 %v3723_v1, %v3701_v47  ;;  %v4188_v47 = vld [vmem:[%s5604_s17] ss:$0 sm:$0xff]  ;;  %s4833_s17 = smov [#allocation8]  }
0x1e15   :  { %s4066_s18 = sshll.u32 %s4833_s17, 4  ;;  %s4067_s18 = int_to_ptr.vmem [resolvable:$true] %s4066_s18 }
0x1e16   :  { %4583 = vmatprep.mubr.msk.f32.mxu0 %vm1887_vm5, %v3725_v2  ;;  %s4787_s19 = scalar_lea.vmem %s4067_s18, 32  ;;  %p4792_p2 = scmp.lt.s32.totalorder %s4067_s18, %s4067_s18 }
0x1e17   :  { %4584 = vmatmul.mubr.msk.f32.vlgmr.msra.gmra.mxu0 %vm1887_vm5, %v3726_v39  ;;  %p4788_p1 = scmp.ne.s32.totalorder %s4067_s18, %s4787_s19  ;;  %p4793_p3 = scmp.lt.s32.totalorder %s4787_s19, %s4787_s19 }
0x1e19   :  { %p4794_p4 = por %p4793_p3, %p4792_p2 }
0x1e1b   :  { %p4795_p5 = pnand %p4794_p4, %p4788_p1 }
0x1ed7   :  { %v4585_v3 = vpop.f32.mrf.mxu0 }
0x1ed8   :  { %v3822_v4 = vadd.f32 %v4585_v3, %v4181_v53 }
0x1ed9   :  { %v3816_v5 = vpop.f32.mrf.mxu0 }
0x1eda   :  { %v3826_v6 = vadd.f32 %v3822_v4, %v3614_v48  ;;  %v3817_v9 = vadd.f32 %v4181_v53, %v3816_v5 }
0x1edc   :  { %v3825_v10 = vadd.f32 %v3817_v9, %v5490_v29  ;;  %v3834_v13 = vsel %vm109_vm0, %v3826_v6, 0.0 }
0x1edd   :  { %3835 = vadd.xlane.f32.xlu0 %v3834_v13 }
0x1ede   :  { %v3831_v16 = vsel %vm109_vm0, %v3825_v10, 0.0 }
0x1edf   :  { %3832 = vadd.xlane.f32.xlu1 %v3831_v16 }
0x1f66   :  { %v3836_v17 = vpop.xlane.xlu0 %3835 }
0x1f67   :  { %v3838_v18 = vmul.f32 0.03125, %v3836_v17 }
0x1f68   :  { %v3833_v8 = vpop.xlane.xlu1 %3832 }
0x1f69   :  { %v3840_v7 = vsub.f32 %v3826_v6, %v3838_v18  ;;  %v3837_v19 = vmul.f32 0.03125, %v3833_v8 }
0x1f6b   :  { %v3839_v20 = vsub.f32 %v3825_v10, %v3837_v19  ;;  %v3842_v21 = vmul.f32 %v3840_v7, %v3840_v7 }
0x1f6d   :  { %v3846_v22 = vsel %vm109_vm0, %v3842_v21, 0.0  ;;  %v3841_v23 = vmul.f32 %v3839_v20, %v3839_v20 }
0x1f6e   :  { %3847 = vadd.xlane.f32.xlu0 %v3846_v22 }
0x1f6f   :  { %v3843_v59 = vsel %vm109_vm0, %v3841_v23, 0.0 }
0x1f70   :  { %3844 = vadd.xlane.f32.xlu1 %v3843_v59 }
0x1ff7   :  { %v3848_v26 = vpop.xlane.xlu0 %3847 }
0x1ff8   :  { %v3850_v43 = vmul.f32 0.03125, %v3848_v26 }
0x1ff9   :  { %v3845_v28 = vpop.xlane.xlu1 %3844 }
0x1ffa   :  { %v3852_v11 = vadd.f32 1e-12, %v3850_v43  ;;  %v3849_v27 = vmul.f32 0.03125, %v3845_v28 }
0x1ffc   :  { %4717 = vrsqrt.f32 %v3852_v11  ;;  %v3851_v14 = vadd.f32 1e-12, %v3849_v27 }
0x1ffe   :  { %4719 = vrsqrt.f32 %v3851_v14 }
0x2009   :  { %v4718_v29 = vpop.eup %4717 }
0x200a   :  { %v3856_v48 = vmul.f32 %v4718_v29, %v3840_v7 }
0x200b   :  { %v4720_v32 = vpop.eup %4719 }
0x200c   :  { %v3855_v36 = vmul.f32 %v4720_v32, %v3839_v20  ;;  %v3864_v38 = vmul.f32 %v4186_v30, %v3856_v48 }
0x200e   :  { %v3863_v15 = vmul.f32 %v4186_v30, %v3855_v36  ;;  %v3872_v40 = vadd.f32 %v4187_v35, %v3864_v38 }
0x2010   :  { %v3871_v41 = vadd.f32 %v4187_v35, %v3863_v15  ;;  %v3874_v42 = vrot.slane %v3872_v40, 7 }
0x2012   :  { %v3877_v45 = vsel %vm3876_vm6, %v3871_v41, %v3874_v42 }
0x2013   :  { %4595 = vmatmul.mubr.msk.f32.vlgmr.msra.gmra.mxu1 %vm109_vm0, %v3877_v45 }
0x2014   :  { %4598 = vmatpush3.msra.mxu1 %v3966_v44  ;;  %4605 = vmatprep.mubr.msk.f32.mxu1 %vm4819_vm1, %v4818_v34 }
0x2015   :  { %4599 = vmatprep.subr.mxu1 %v4818_v34 }
0x2016   :  { %4600 = vmatpush3.msra.mxu1 %v3965_v33 }
0x2017   :  { %4601 = vmatprep.subr.mxu1 %v4818_v34 }
0x2018   :  { %4602 = vmatpush3.msra.mxu1 %v3964_v31 }
0x2019   :  { %4603 = vmatprep.subr.mxu1 %v4818_v34 }
0x201a   :  { %4604 = vmatpush3.msra.mxu1 %v3963_v46 }
0x20d3   :  { %v3958_v49 = vpop.f32.mrf.mxu1 }
0x20d4   :  { %v3959_v50 = vadd.f32 %v4188_v47, %v3958_v49 }
0x20d5   :  { %v4596_v52 = vpop.f32.mrf.mxu1 }
0x20d6   :  { %v3962_v54 = vmax.f32 %v3959_v50, 0.0 }
0x20d8   :  { %4606 = vmatmul.mubr.msk.f32.vlgmr.msra.gmra.mxu1 %vm109_vm0, %v3962_v54 }
0x2198   :  { %v4043_v58 = vpop.f32.mrf.mxu1 }
0x2199   :  { %v4044_v37 = vadd.f32 %v4190_v56, %v4043_v58 }
0x219a   :  { %v4607_v55 = vpop.f32.mrf.mxu1 }
0x219b   :  { %v4048_v34 = vsel %vm4047_vm7, %v4044_v37, -inf }
0x219c   :  { %4049 = vmax.xlane.f32.xlu0 %v4048_v34 }
0x2225   :  { %v4050_v57 = vpop.xlane.xlu0 %4049 }
0x2226   :  { %v4051_v60 = vsub.f32 %v4044_v37, %v4050_v57 }
0x2228   :  { %v4052_v51 = vmul.f32 1.442695, %v4051_v60 }
0x222a   :  { %4721 = vpow2.f32 %v4052_v51 }
0x2237   :  { %v4722_v61 = vpop.eup %4721 }
0x2238   :  { %v4054_v62 = vsel %vm4047_vm7, %v4722_v61, 0.0 }
0x2239   :  { %4055 = vadd.xlane.f32.xlu1 %v4054_v62 }
0x22c2   :  { %v4056_v0 = vpop.xlane.xlu1 %4055 }
0x22c3   :  { %4723 = vrcp.f32 %v4056_v0 }
0x22d0   :  { %v4724_v1 = vpop.eup %4723 }
0x22d1   :  { %v4058_v2 = vmul.f32 %v4724_v1, %v4722_v61 }
0x22d3   :  { %4059 = vst.msk [vmem:[#allocation8] sm:$0x3] %vm4047_vm7, %v4058_v2 }
0x22d4   :  { %4798 = shalt.err (!%p4795_p5)
}
0x22d5   :  { %4069 = dma.vmem_to_hbm [thread:$0]  %s4067_s18, 32, %s5607_s20, [#allocation4]  }
0x22d6   :  { %4811 = dma.done.wait [#allocation4], 32  }
0x22d7   :  { %4812 = vsyncadd [#allocation4], 4294967264 }
0x22d8   :  { %4073 = vsyncpa [#allocation3], 1 }
0x22d9   :  { %4074 = vsyncpa [#allocation6], 1 }
0x22da   :  { %4075 = vsyncpa [#allocation4], 1 }

</bundles_post_ra>
